<compile_context>
chip_gen: v7x
topology: tpu7x:2x2x1
jax: 0.10.0
libtpu: 0.0.40
codegen_flags: <defaults>
</compile_context>

<pallas_src>
import functools

import jax
import jax.numpy as jnp
from jax import lax
from jax.experimental import pallas as pl
from jax.experimental.pallas import tpu as pltpu


# ---------------------------------------------------------------------------
# Fused Conv2d(+bias)(+ReLU) kernel: one batch element (whole feature map) per step
# ---------------------------------------------------------------------------
def _conv_kernel(*args, k, stride, Ho, Wo, relu, nphase):
    """args = (x_phase_refs[nphase], w_ref, b_ref, o_ref)

    x_phase_refs[p]: (1, Hq, Wq, Cin)  phase p of the padded NHWC input
    w_ref:           (k*k, Cin, Cout)  tap-major weight
    b_ref:           (1, Cout)         f32 bias
    o_ref:           (1, Ho*Wo, Cout)  output (spatial flattened)
    """
    x_refs = args[:nphase]
    w_ref, b_ref, o_ref = args[nphase], args[nphase + 1], args[nphase + 2]
    cout = o_ref.shape[-1]

    acc = jnp.zeros((Ho * Wo, cout), jnp.float32)
    # k*k shifted matmuls accumulated in f32 (no im2col slab anywhere).
    for i in range(k):
        for j in range(k):
            ph = (i % stride) * stride + (j % stride)
            iq, jq = i // stride, j // stride
            xs = x_refs[ph][0, pl.ds(iq, Ho), pl.ds(jq, Wo), :]       # (Ho, Wo, Cin)
            xs = xs.reshape(Ho * Wo, xs.shape[-1])
            acc = acc + jnp.dot(xs, w_ref[i * k + j],
                                preferred_element_type=jnp.float32)
    acc = acc + b_ref[...]                                            # f32 bias
    if relu:
        acc = jnp.maximum(acc, 0.0)
    o_ref[0] = acc.astype(o_ref.dtype)


def _conv2d_nhwc(x, w_taps, bias, *, k, stride, pad, relu,
                 compute_dtype=jnp.float32):
    """Conv2d over NHWC `x` with tap-major weight (k*k, Cin, Cout)."""
    N, H, W, Cin = x.shape
    Cout = w_taps.shape[-1]
    s = stride
    Ho = (H + 2 * pad - k) // s + 1
    Wo = (W + 2 * pad - k) // s + 1
    # Pad so the padded extent is a multiple of s and covers every tap.
    tH = s * (Ho - 1) + s * (-(-k // s))
    tW = s * (Wo - 1) + s * (-(-k // s))
    xc = x.astype(compute_dtype)
    xp = lax.pad(xc, jnp.zeros((), xc.dtype),
                 ((0, 0, 0), (pad, tH - H - pad, 0),
                  (pad, tW - W - pad, 0), (0, 0, 0)))
    # Phase split (free for s == 1): phase (a, b) holds rows a::s / cols b::s, so
    # the kernel only ever does contiguous loads even for strided convs.
    if s == 1:
        phases = [xp]
    else:
        phases = [xp[:, a::s, b::s, :] for a in range(s) for b in range(s)]
    Hq, Wq = phases[0].shape[1], phases[0].shape[2]

    w = w_taps.astype(compute_dtype)
    if bias is None:
        bias = jnp.zeros((Cout,), jnp.float32)
    b2 = bias.reshape(1, Cout).astype(jnp.float32)

    kernel = functools.partial(_conv_kernel, k=k, stride=s, Ho=Ho, Wo=Wo,
                               relu=relu, nphase=len(phases))
    # NOTE: output lanes = Cout (NHWC kept end-to-end per review); for production
    # sizes pad Cout toward 128 or emit (Cout, M) for fully lane-dense stores.
    out = pl.pallas_call(
        kernel,
        out_shape=jax.ShapeDtypeStruct((N, Ho * Wo, Cout), x.dtype),
        grid_spec=pltpu.PrefetchScalarGridSpec(
            num_scalar_prefetch=0,
            # Whole feature map per step. TODO(synk): row-tile with a halo/manual
            # DMA once feature maps no longer fit VMEM.
            grid=(N,),
            in_specs=[pl.BlockSpec((1, Hq, Wq, Cin), lambda n: (n, 0, 0, 0))
                      for _ in phases]
                     + [pl.BlockSpec((k * k, Cin, Cout), lambda n: (0, 0, 0)),
                        pl.BlockSpec((1, Cout), lambda n: (0, 0))],
            out_specs=pl.BlockSpec((1, Ho * Wo, Cout), lambda n: (n, 0, 0)),
        ),
        compiler_params=pltpu.CompilerParams(
            dimension_semantics=("parallel",)),
    )(*phases, w, b2)
    return out.reshape(N, Ho, Wo, Cout)


def basic_conv_nhwc(x, weight_oihw, bias, *, stride, relu=True,
                    compute_dtype=jnp.float32):
    """BasicConv default path: Conv2d(pad=k//2, stride) + bias + optional ReLU."""
    Cout, Cin, k, _ = weight_oihw.shape
    w = jnp.transpose(weight_oihw, (2, 3, 1, 0)).reshape(k * k, Cin, Cout)
    return _conv2d_nhwc(x, w, bias, k=k, stride=stride, pad=k // 2, relu=relu,
                        compute_dtype=compute_dtype)


def conv_transpose_nhwc(x, weight_iohw, bias, *, stride, padding, relu=False,
                        compute_dtype=jnp.float32):
    """ConvTranspose2d == stride-1 conv on the zero-dilated input with flipped,
    in/out-transposed weights; reuses the same fused Pallas kernel."""
    Cin, Cout, k, _ = weight_iohw.shape
    wf = weight_iohw[:, :, ::-1, ::-1]
    w = jnp.transpose(wf, (2, 3, 0, 1)).reshape(k * k, Cin, Cout)
    edge = k - 1 - padding
    xd = lax.pad(x, jnp.zeros((), x.dtype),
                 ((0, 0, 0), (edge, edge, stride - 1),
                  (edge, edge, stride - 1), (0, 0, 0)))
    return _conv2d_nhwc(xd, w, bias, k=k, stride=1, pad=0, relu=relu,
                        compute_dtype=compute_dtype)


# ---------------------------------------------------------------------------
# Bilinear x2 upsample (align_corners=False, PyTorch semantics) — plain JAX glue
# ---------------------------------------------------------------------------
def _bilinear_x2_idx(L):
    o = jnp.arange(2 * L, dtype=jnp.float32)
    src = jnp.clip(o * 0.5 - 0.25, 0.0, float(L - 1))
    i0 = jnp.floor(src).astype(jnp.int32)
    i1 = jnp.minimum(i0 + 1, L - 1)
    f = src - i0.astype(jnp.float32)
    return i0, i1, f


def upsample_bilinear_x2(x, h_axis, w_axis):
    # TODO(synk): tiny glue op; could be fused into the lastconv kernel epilogue.
    def up(y, axis):
        L = y.shape[axis]
        i0, i1, f = _bilinear_x2_idx(L)
        shp = [1] * y.ndim
        shp[axis] = 2 * L
        f = f.reshape(shp).astype(y.dtype)
        return jnp.take(y, i0, axis=axis) * (1.0 - f) + jnp.take(y, i1, axis=axis) * f
    return up(up(x, h_axis), w_axis)


# ---------------------------------------------------------------------------
# IFBlock forward (Pallas path)
# ---------------------------------------------------------------------------
def if_block_forward(x_nchw, params, compute_dtype=jnp.float32):
    x = jnp.transpose(x_nchw, (0, 2, 3, 1))                  # single NCHW -> NHWC
    for w, b in params["conv0"]:
        x = basic_conv_nhwc(x, w, b, stride=2, relu=True, compute_dtype=compute_dtype)
    z = x
    for w, b in params["convblock"]:
        z = basic_conv_nhwc(z, w, b, stride=1, relu=True, compute_dtype=compute_dtype)
    x = z + x                                                # residual
    wt, bt = params["last"]
    tmp = conv_transpose_nhwc(x, wt, bt, stride=2, padding=1, relu=False,
                              compute_dtype=compute_dtype)
    tmp = upsample_bilinear_x2(tmp, 1, 2)
    tmp = jnp.transpose(tmp, (0, 3, 1, 2))                   # single NHWC -> NCHW
    flow = tmp[:, :4] * 2.0
    mask = tmp[:, 4:5]
    return flow, mask


# ---------------------------------------------------------------------------
# Pure-JAX reference (independent of the Pallas path)
# ---------------------------------------------------------------------------
def _conv_ref(x, w, b, stride, relu):
    pad = w.shape[2] // 2
    y = lax.conv_general_dilated(x, w, (stride, stride), ((pad, pad), (pad, pad)),
                                 dimension_numbers=("NCHW", "OIHW", "NCHW"))
    y = y + b[None, :, None, None]
    return jnp.maximum(y, 0.0) if relu else y


def _deconv_ref(x, wt, b, stride, padding):
    # scatter-add definition of nn.ConvTranspose2d; weight layout (Cin, Cout, k, k)
    N, Cin, H, W = x.shape
    _, Cout, k, _ = wt.shape
    Hf = (H - 1) * stride + k
    Wf = (W - 1) * stride + k
    full = jnp.zeros((N, Cout, Hf, Wf), jnp.float32)
    contrib = jnp.einsum("nchw,cdij->ndhwij", x, wt)
    for i in range(k):
        for j in range(k):
            full = full.at[:, :, i:i + (H - 1) * stride + 1:stride,
                                 j:j + (W - 1) * stride + 1:stride].add(contrib[..., i, j])
    out = full[:, :, padding:Hf - padding, padding:Wf - padding]
    return out + b[None, :, None, None]


def if_block_ref(x, params):
    for w, b in params["conv0"]:
        x = _conv_ref(x, w, b, 2, True)
    z = x
    for w, b in params["convblock"]:
        z = _conv_ref(z, w, b, 1, True)
    x = z + x
    wt, bt = params["last"]
    tmp = _deconv_ref(x, wt, bt, 2, 1)
    tmp = upsample_bilinear_x2(tmp, 2, 3)
    return tmp[:, :4] * 2.0, tmp[:, 4:5]


if __name__ == "__main__":
    key = jax.random.PRNGKey(0)

    N, in_planes, H, W = 2, 4, 16, 16
    c = 32                                  # IFBlock(in_planes=4, c=32): small demo config

    def conv_init(k_, cin, cout, ksz):
        kw, kb = jax.random.split(k_)
        w = jax.random.normal(kw, (cout, cin, ksz, ksz), jnp.float32) / jnp.sqrt(cin * ksz * ksz)
        b = jax.random.normal(kb, (cout,), jnp.float32) * 0.1
        return w, b

    def deconv_init(k_, cin, cout, ksz):
        kw, kb = jax.random.split(k_)
        w = jax.random.normal(kw, (cin, cout, ksz, ksz), jnp.float32) / jnp.sqrt(cin * ksz * ksz)
        b = jax.random.normal(kb, (cout,), jnp.float32) * 0.1
        return w, b

    keys = jax.random.split(key, 13)
    params = {
        "conv0": [conv_init(keys[0], in_planes, c // 2, 3),
                  conv_init(keys[1], c // 2, c, 3)],
        "convblock": [conv_init(keys[2 + l], c, c, 3) for l in range(8)],
        "last": deconv_init(keys[10], c, 4 + 1, 4),
    }
    x = jax.random.normal(keys[11], (N, in_planes, H, W), jnp.float32)

    flow, mask = jax.jit(if_block_forward)(x, params)
    flow = jax.block_until_ready(flow)
    mask = jax.block_until_ready(mask)

    flow_r, mask_r = if_block_ref(x, params)
    assert flow.shape == (N, 4, H, W), flow.shape
    assert mask.shape == (N, 1, H, W), mask.shape
    assert jnp.allclose(flow, flow_r, atol=2e-3, rtol=2e-3), \
        float(jnp.max(jnp.abs(flow - flow_r)))
    assert jnp.allclose(mask, mask_r, atol=2e-3, rtol=2e-3), \
        float(jnp.max(jnp.abs(mask - mask_r)))

    print("KERNEL_OK")
</pallas_src>

<mosaic_0001>
module attributes {stable_mosaic.version = 11 : i64} {
  func.func @_conv_kernel(%arg0: i32, %arg1: memref<1x9x9x4xf32, #tpu.memory_space<vmem>>, %arg2: memref<1x9x9x4xf32, #tpu.memory_space<vmem>>, %arg3: memref<1x9x9x4xf32, #tpu.memory_space<vmem>>, %arg4: memref<1x9x9x4xf32, #tpu.memory_space<vmem>>, %arg5: memref<9x4x16xf32, #tpu.memory_space<vmem>>, %arg6: memref<1x16xf32, #tpu.memory_space<vmem>>, %arg7: memref<1x64x16xf32, #tpu.memory_space<vmem>>) attributes {dimension_semantics = [#tpu.dimension_semantics<parallel>], iteration_bounds = array<i64: 2>, scalar_prefetch = 0 : i64, scratch_operands = 0 : i64, tpu.core_type = #tpu.core_type<tc>, window_params = [{transform_indices = @transform_0, window_bounds = array<i64: 1, 9, 9, 4>}, {transform_indices = @transform_1, window_bounds = array<i64: 1, 9, 9, 4>}, {transform_indices = @transform_2, window_bounds = array<i64: 1, 9, 9, 4>}, {transform_indices = @transform_3, window_bounds = array<i64: 1, 9, 9, 4>}, {pipeline_mode = #tpu.pipeline_mode<synchronous>, transform_indices = @transform_4, window_bounds = array<i64: 9, 4, 16>}, {pipeline_mode = #tpu.pipeline_mode<synchronous>, transform_indices = @transform_5, window_bounds = array<i64: 1, 16>}, {transform_indices = @transform_6, window_bounds = array<i64: 1, 64, 16>}]} {
    %cst = arith.constant 0.000000e+00 : f32
    %0 = vector.broadcast %cst : f32 to vector<64x16xf32>
    %c0 = arith.constant 0 : index
    %c0_0 = arith.constant 0 : index
    %c0_1 = arith.constant 0 : index
    %c0_2 = arith.constant 0 : index
    %1 = vector.load %arg1[%c0, %c0_0, %c0_1, %c0_2] : memref<1x9x9x4xf32, #tpu.memory_space<vmem>>, vector<1x8x8x4xf32>
    %2 = vector.shape_cast %1 : vector<1x8x8x4xf32> to vector<8x8x4xf32>
    %3 = vector.shape_cast %2 : vector<8x8x4xf32> to vector<64x4xf32>
    %c0_3 = arith.constant 0 : index
    %c0_4 = arith.constant 0 : index
    %c0_5 = arith.constant 0 : index
    %4 = vector.load %arg5[%c0_3, %c0_4, %c0_5] : memref<9x4x16xf32, #tpu.memory_space<vmem>>, vector<1x4x16xf32>
    %5 = vector.shape_cast %4 : vector<1x4x16xf32> to vector<4x16xf32>
    %cst_6 = arith.constant dense<0.000000e+00> : vector<64x16xf32>
    %6 = tpu.matmul %3, %5, %cst_6 {dimension_numbers = #tpu.dot_dimension_numbers<[1], [0], [0], [1], [0, 0, 1, 1], [], []>} : vector<64x4xf32>, vector<4x16xf32>, vector<64x16xf32> -> vector<64x16xf32>
    %7 = arith.addf %0, %6 : vector<64x16xf32>
    %c0_7 = arith.constant 0 : index
    %c0_8 = arith.constant 0 : index
    %c0_9 = arith.constant 0 : index
    %c0_10 = arith.constant 0 : index
    %8 = vector.load %arg2[%c0_7, %c0_8, %c0_9, %c0_10] : memref<1x9x9x4xf32, #tpu.memory_space<vmem>>, vector<1x8x8x4xf32>
    %9 = vector.shape_cast %8 : vector<1x8x8x4xf32> to vector<8x8x4xf32>
    %10 = vector.shape_cast %9 : vector<8x8x4xf32> to vector<64x4xf32>
    %c1 = arith.constant 1 : index
    %c0_11 = arith.constant 0 : index
    %c0_12 = arith.constant 0 : index
    %11 = vector.load %arg5[%c1, %c0_11, %c0_12] : memref<9x4x16xf32, #tpu.memory_space<vmem>>, vector<1x4x16xf32>
    %12 = vector.shape_cast %11 : vector<1x4x16xf32> to vector<4x16xf32>
    %cst_13 = arith.constant dense<0.000000e+00> : vector<64x16xf32>
    %13 = tpu.matmul %10, %12, %cst_13 {dimension_numbers = #tpu.dot_dimension_numbers<[1], [0], [0], [1], [0, 0, 1, 1], [], []>} : vector<64x4xf32>, vector<4x16xf32>, vector<64x16xf32> -> vector<64x16xf32>
    %14 = arith.addf %7, %13 : vector<64x16xf32>
    %c0_14 = arith.constant 0 : index
    %c0_15 = arith.constant 0 : index
    %c1_16 = arith.constant 1 : index
    %c0_17 = arith.constant 0 : index
    %15 = vector.load %arg1[%c0_14, %c0_15, %c1_16, %c0_17] : memref<1x9x9x4xf32, #tpu.memory_space<vmem>>, vector<1x8x8x4xf32>
    %16 = vector.shape_cast %15 : vector<1x8x8x4xf32> to vector<8x8x4xf32>
    %17 = vector.shape_cast %16 : vector<8x8x4xf32> to vector<64x4xf32>
    %c2 = arith.constant 2 : index
    %c0_18 = arith.constant 0 : index
    %c0_19 = arith.constant 0 : index
    %18 = vector.load %arg5[%c2, %c0_18, %c0_19] : memref<9x4x16xf32, #tpu.memory_space<vmem>>, vector<1x4x16xf32>
    %19 = vector.shape_cast %18 : vector<1x4x16xf32> to vector<4x16xf32>
    %cst_20 = arith.constant dense<0.000000e+00> : vector<64x16xf32>
    %20 = tpu.matmul %17, %19, %cst_20 {dimension_numbers = #tpu.dot_dimension_numbers<[1], [0], [0], [1], [0, 0, 1, 1], [], []>} : vector<64x4xf32>, vector<4x16xf32>, vector<64x16xf32> -> vector<64x16xf32>
    %21 = arith.addf %14, %20 : vector<64x16xf32>
    %c0_21 = arith.constant 0 : index
    %c0_22 = arith.constant 0 : index
    %c0_23 = arith.constant 0 : index
    %c0_24 = arith.constant 0 : index
    %22 = vector.load %arg3[%c0_21, %c0_22, %c0_23, %c0_24] : memref<1x9x9x4xf32, #tpu.memory_space<vmem>>, vector<1x8x8x4xf32>
    %23 = vector.shape_cast %22 : vector<1x8x8x4xf32> to vector<8x8x4xf32>
    %24 = vector.shape_cast %23 : vector<8x8x4xf32> to vector<64x4xf32>
    %c3 = arith.constant 3 : index
    %c0_25 = arith.constant 0 : index
    %c0_26 = arith.constant 0 : index
    %25 = vector.load %arg5[%c3, %c0_25, %c0_26] : memref<9x4x16xf32, #tpu.memory_space<vmem>>, vector<1x4x16xf32>
    %26 = vector.shape_cast %25 : vector<1x4x16xf32> to vector<4x16xf32>
    %cst_27 = arith.constant dense<0.000000e+00> : vector<64x16xf32>
    %27 = tpu.matmul %24, %26, %cst_27 {dimension_numbers = #tpu.dot_dimension_numbers<[1], [0], [0], [1], [0, 0, 1, 1], [], []>} : vector<64x4xf32>, vector<4x16xf32>, vector<64x16xf32> -> vector<64x16xf32>
    %28 = arith.addf %21, %27 : vector<64x16xf32>
    %c0_28 = arith.constant 0 : index
    %c0_29 = arith.constant 0 : index
    %c0_30 = arith.constant 0 : index
    %c0_31 = arith.constant 0 : index
    %29 = vector.load %arg4[%c0_28, %c0_29, %c0_30, %c0_31] : memref<1x9x9x4xf32, #tpu.memory_space<vmem>>, vector<1x8x8x4xf32>
    %30 = vector.shape_cast %29 : vector<1x8x8x4xf32> to vector<8x8x4xf32>
    %31 = vector.shape_cast %30 : vector<8x8x4xf32> to vector<64x4xf32>
    %c4 = arith.constant 4 : index
    %c0_32 = arith.constant 0 : index
    %c0_33 = arith.constant 0 : index
    %32 = vector.load %arg5[%c4, %c0_32, %c0_33] : memref<9x4x16xf32, #tpu.memory_space<vmem>>, vector<1x4x16xf32>
    %33 = vector.shape_cast %32 : vector<1x4x16xf32> to vector<4x16xf32>
    %cst_34 = arith.constant dense<0.000000e+00> : vector<64x16xf32>
    %34 = tpu.matmul %31, %33, %cst_34 {dimension_numbers = #tpu.dot_dimension_numbers<[1], [0], [0], [1], [0, 0, 1, 1], [], []>} : vector<64x4xf32>, vector<4x16xf32>, vector<64x16xf32> -> vector<64x16xf32>
    %35 = arith.addf %28, %34 : vector<64x16xf32>
    %c0_35 = arith.constant 0 : index
    %c0_36 = arith.constant 0 : index
    %c1_37 = arith.constant 1 : index
    %c0_38 = arith.constant 0 : index
    %36 = vector.load %arg3[%c0_35, %c0_36, %c1_37, %c0_38] : memref<1x9x9x4xf32, #tpu.memory_space<vmem>>, vector<1x8x8x4xf32>
    %37 = vector.shape_cast %36 : vector<1x8x8x4xf32> to vector<8x8x4xf32>
    %38 = vector.shape_cast %37 : vector<8x8x4xf32> to vector<64x4xf32>
    %c5 = arith.constant 5 : index
    %c0_39 = arith.constant 0 : index
    %c0_40 = arith.constant 0 : index
    %39 = vector.load %arg5[%c5, %c0_39, %c0_40] : memref<9x4x16xf32, #tpu.memory_space<vmem>>, vector<1x4x16xf32>
    %40 = vector.shape_cast %39 : vector<1x4x16xf32> to vector<4x16xf32>
    %cst_41 = arith.constant dense<0.000000e+00> : vector<64x16xf32>
    %41 = tpu.matmul %38, %40, %cst_41 {dimension_numbers = #tpu.dot_dimension_numbers<[1], [0], [0], [1], [0, 0, 1, 1], [], []>} : vector<64x4xf32>, vector<4x16xf32>, vector<64x16xf32> -> vector<64x16xf32>
    %42 = arith.addf %35, %41 : vector<64x16xf32>
    %c0_42 = arith.constant 0 : index
    %c1_43 = arith.constant 1 : index
    %c0_44 = arith.constant 0 : index
    %c0_45 = arith.constant 0 : index
    %43 = vector.load %arg1[%c0_42, %c1_43, %c0_44, %c0_45] : memref<1x9x9x4xf32, #tpu.memory_space<vmem>>, vector<1x8x8x4xf32>
    %44 = vector.shape_cast %43 : vector<1x8x8x4xf32> to vector<8x8x4xf32>
    %45 = vector.shape_cast %44 : vector<8x8x4xf32> to vector<64x4xf32>
    %c6 = arith.constant 6 : index
    %c0_46 = arith.constant 0 : index
    %c0_47 = arith.constant 0 : index
    %46 = vector.load %arg5[%c6, %c0_46, %c0_47] : memref<9x4x16xf32, #tpu.memory_space<vmem>>, vector<1x4x16xf32>
    %47 = vector.shape_cast %46 : vector<1x4x16xf32> to vector<4x16xf32>
    %cst_48 = arith.constant dense<0.000000e+00> : vector<64x16xf32>
    %48 = tpu.matmul %45, %47, %cst_48 {dimension_numbers = #tpu.dot_dimension_numbers<[1], [0], [0], [1], [0, 0, 1, 1], [], []>} : vector<64x4xf32>, vector<4x16xf32>, vector<64x16xf32> -> vector<64x16xf32>
    %49 = arith.addf %42, %48 : vector<64x16xf32>
    %c0_49 = arith.constant 0 : index
    %c1_50 = arith.constant 1 : index
    %c0_51 = arith.constant 0 : index
    %c0_52 = arith.constant 0 : index
    %50 = vector.load %arg2[%c0_49, %c1_50, %c0_51, %c0_52] : memref<1x9x9x4xf32, #tpu.memory_space<vmem>>, vector<1x8x8x4xf32>
    %51 = vector.shape_cast %50 : vector<1x8x8x4xf32> to vector<8x8x4xf32>
    %52 = vector.shape_cast %51 : vector<8x8x4xf32> to vector<64x4xf32>
    %c7 = arith.constant 7 : index
    %c0_53 = arith.constant 0 : index
    %c0_54 = arith.constant 0 : index
    %53 = vector.load %arg5[%c7, %c0_53, %c0_54] : memref<9x4x16xf32, #tpu.memory_space<vmem>>, vector<1x4x16xf32>
    %54 = vector.shape_cast %53 : vector<1x4x16xf32> to vector<4x16xf32>
    %cst_55 = arith.constant dense<0.000000e+00> : vector<64x16xf32>
    %55 = tpu.matmul %52, %54, %cst_55 {dimension_numbers = #tpu.dot_dimension_numbers<[1], [0], [0], [1], [0, 0, 1, 1], [], []>} : vector<64x4xf32>, vector<4x16xf32>, vector<64x16xf32> -> vector<64x16xf32>
    %56 = arith.addf %49, %55 : vector<64x16xf32>
    %c0_56 = arith.constant 0 : index
    %c1_57 = arith.constant 1 : index
    %c1_58 = arith.constant 1 : index
    %c0_59 = arith.constant 0 : index
    %57 = vector.load %arg1[%c0_56, %c1_57, %c1_58, %c0_59] : memref<1x9x9x4xf32, #tpu.memory_space<vmem>>, vector<1x8x8x4xf32>
    %58 = vector.shape_cast %57 : vector<1x8x8x4xf32> to vector<8x8x4xf32>
    %59 = vector.shape_cast %58 : vector<8x8x4xf32> to vector<64x4xf32>
    %c8 = arith.constant 8 : index
    %c0_60 = arith.constant 0 : index
    %c0_61 = arith.constant 0 : index
    %60 = vector.load %arg5[%c8, %c0_60, %c0_61] : memref<9x4x16xf32, #tpu.memory_space<vmem>>, vector<1x4x16xf32>
    %61 = vector.shape_cast %60 : vector<1x4x16xf32> to vector<4x16xf32>
    %cst_62 = arith.constant dense<0.000000e+00> : vector<64x16xf32>
    %62 = tpu.matmul %59, %61, %cst_62 {dimension_numbers = #tpu.dot_dimension_numbers<[1], [0], [0], [1], [0, 0, 1, 1], [], []>} : vector<64x4xf32>, vector<4x16xf32>, vector<64x16xf32> -> vector<64x16xf32>
    %63 = arith.addf %56, %62 : vector<64x16xf32>
    %c0_63 = arith.constant 0 : index
    %c0_64 = arith.constant 0 : index
    %64 = vector.load %arg6[%c0_63, %c0_64] : memref<1x16xf32, #tpu.memory_space<vmem>>, vector<1x16xf32>
    %65 = vector.broadcast %64 : vector<1x16xf32> to vector<64x16xf32>
    %66 = arith.addf %63, %65 : vector<64x16xf32>
    %cst_65 = arith.constant 0.000000e+00 : f32
    %67 = vector.broadcast %cst_65 : f32 to vector<64x16xf32>
    %68 = arith.maximumf %66, %67 : vector<64x16xf32>
    %c0_66 = arith.constant 0 : index
    %c0_67 = arith.constant 0 : index
    %c0_68 = arith.constant 0 : index
    %69 = vector.load %arg7[%c0_66, %c0_67, %c0_68] : memref<1x64x16xf32, #tpu.memory_space<vmem>>, vector<1x64x16xf32>
    %70 = vector.shape_cast %69 : vector<1x64x16xf32> to vector<64x16xf32>
    %71 = vector.shape_cast %68 : vector<64x16xf32> to vector<1x64x16xf32>
    tpu.vector_store %arg7[%c0_66, %c0_67, %c0_68], %71 {strides = array<i32>} : memref<1x64x16xf32, #tpu.memory_space<vmem>>, vector<1x64x16xf32>,
    return
  }
  func.func @transform_0(%arg0: i32) -> (i32, i32, i32, i32) {
    %c0_i32 = arith.constant 0 : i32
    %c0_i32_0 = arith.constant 0 : i32
    %c0_i32_1 = arith.constant 0 : i32
    %c0_i32_2 = arith.constant 0 : i32
    return %arg0, %c0_i32, %c0_i32_0, %c0_i32_1 : i32, i32, i32, i32
  }
  func.func @transform_1(%arg0: i32) -> (i32, i32, i32, i32) {
    %c0_i32 = arith.constant 0 : i32
    %c0_i32_0 = arith.constant 0 : i32
    %c0_i32_1 = arith.constant 0 : i32
    %c0_i32_2 = arith.constant 0 : i32
    return %arg0, %c0_i32, %c0_i32_0, %c0_i32_1 : i32, i32, i32, i32
  }
  func.func @transform_2(%arg0: i32) -> (i32, i32, i32, i32) {
    %c0_i32 = arith.constant 0 : i32
    %c0_i32_0 = arith.constant 0 : i32
    %c0_i32_1 = arith.constant 0 : i32
    %c0_i32_2 = arith.constant 0 : i32
    return %arg0, %c0_i32, %c0_i32_0, %c0_i32_1 : i32, i32, i32, i32
  }
  func.func @transform_3(%arg0: i32) -> (i32, i32, i32, i32) {
    %c0_i32 = arith.constant 0 : i32
    %c0_i32_0 = arith.constant 0 : i32
    %c0_i32_1 = arith.constant 0 : i32
    %c0_i32_2 = arith.constant 0 : i32
    return %arg0, %c0_i32, %c0_i32_0, %c0_i32_1 : i32, i32, i32, i32
  }
  func.func @transform_4(%arg0: i32) -> (i32, i32, i32) {
    %c0_i32 = arith.constant 0 : i32
    %c0_i32_0 = arith.constant 0 : i32
    %c0_i32_1 = arith.constant 0 : i32
    %c0_i32_2 = arith.constant 0 : i32
    return %c0_i32, %c0_i32_0, %c0_i32_1 : i32, i32, i32
  }
  func.func @transform_5(%arg0: i32) -> (i32, i32) {
    %c0_i32 = arith.constant 0 : i32
    %c0_i32_0 = arith.constant 0 : i32
    %c0_i32_1 = arith.constant 0 : i32
    return %c0_i32, %c0_i32_0 : i32, i32
  }
  func.func @transform_6(%arg0: i32) -> (i32, i32, i32) {
    %c0_i32 = arith.constant 0 : i32
    %c0_i32_0 = arith.constant 0 : i32
    %c0_i32_1 = arith.constant 0 : i32
    return %arg0, %c0_i32, %c0_i32_0 : i32, i32, i32
  }
}

module attributes {stable_mosaic.version = 11 : i64} {
  func.func @_conv_kernel(%arg0: i32, %arg1: memref<1x5x5x16xf32, #tpu.memory_space<vmem>>, %arg2: memref<1x5x5x16xf32, #tpu.memory_space<vmem>>, %arg3: memref<1x5x5x16xf32, #tpu.memory_space<vmem>>, %arg4: memref<1x5x5x16xf32, #tpu.memory_space<vmem>>, %arg5: memref<9x16x32xf32, #tpu.memory_space<vmem>>, %arg6: memref<1x32xf32, #tpu.memory_space<vmem>>, %arg7: memref<1x16x32xf32, #tpu.memory_space<vmem>>) attributes {dimension_semantics = [#tpu.dimension_semantics<parallel>], iteration_bounds = array<i64: 2>, scalar_prefetch = 0 : i64, scratch_operands = 0 : i64, tpu.core_type = #tpu.core_type<tc>, window_params = [{transform_indices = @transform_0, window_bounds = array<i64: 1, 5, 5, 16>}, {transform_indices = @transform_1, window_bounds = array<i64: 1, 5, 5, 16>}, {transform_indices = @transform_2, window_bounds = array<i64: 1, 5, 5, 16>}, {transform_indices = @transform_3, window_bounds = array<i64: 1, 5, 5, 16>}, {pipeline_mode = #tpu.pipeline_mode<synchronous>, transform_indices = @transform_4, window_bounds = array<i64: 9, 16, 32>}, {pipeline_mode = #tpu.pipeline_mode<synchronous>, transform_indices = @transform_5, window_bounds = array<i64: 1, 32>}, {transform_indices = @transform_6, window_bounds = array<i64: 1, 16, 32>}]} {
    %cst = arith.constant 0.000000e+00 : f32
    %0 = vector.broadcast %cst : f32 to vector<16x32xf32>
    %c0 = arith.constant 0 : index
    %c0_0 = arith.constant 0 : index
    %c0_1 = arith.constant 0 : index
    %c0_2 = arith.constant 0 : index
    %1 = vector.load %arg1[%c0, %c0_0, %c0_1, %c0_2] : memref<1x5x5x16xf32, #tpu.memory_space<vmem>>, vector<1x4x4x16xf32>
    %2 = vector.shape_cast %1 : vector<1x4x4x16xf32> to vector<4x4x16xf32>
    %3 = vector.shape_cast %2 : vector<4x4x16xf32> to vector<16x16xf32>
    %c0_3 = arith.constant 0 : index
    %c0_4 = arith.constant 0 : index
    %c0_5 = arith.constant 0 : index
    %4 = vector.load %arg5[%c0_3, %c0_4, %c0_5] : memref<9x16x32xf32, #tpu.memory_space<vmem>>, vector<1x16x32xf32>
    %5 = vector.shape_cast %4 : vector<1x16x32xf32> to vector<16x32xf32>
    %cst_6 = arith.constant dense<0.000000e+00> : vector<16x32xf32>
    %6 = tpu.matmul %3, %5, %cst_6 {dimension_numbers = #tpu.dot_dimension_numbers<[1], [0], [0], [1], [0, 0, 1, 1], [], []>} : vector<16x16xf32>, vector<16x32xf32>, vector<16x32xf32> -> vector<16x32xf32>
    %7 = arith.addf %0, %6 : vector<16x32xf32>
    %c0_7 = arith.constant 0 : index
    %c0_8 = arith.constant 0 : index
    %c0_9 = arith.constant 0 : index
    %c0_10 = arith.constant 0 : index
    %8 = vector.load %arg2[%c0_7, %c0_8, %c0_9, %c0_10] : memref<1x5x5x16xf32, #tpu.memory_space<vmem>>, vector<1x4x4x16xf32>
    %9 = vector.shape_cast %8 : vector<1x4x4x16xf32> to vector<4x4x16xf32>
    %10 = vector.shape_cast %9 : vector<4x4x16xf32> to vector<16x16xf32>
    %c1 = arith.constant 1 : index
    %c0_11 = arith.constant 0 : index
    %c0_12 = arith.constant 0 : index
    %11 = vector.load %arg5[%c1, %c0_11, %c0_12] : memref<9x16x32xf32, #tpu.memory_space<vmem>>, vector<1x16x32xf32>
    %12 = vector.shape_cast %11 : vector<1x16x32xf32> to vector<16x32xf32>
    %cst_13 = arith.constant dense<0.000000e+00> : vector<16x32xf32>
    %13 = tpu.matmul %10, %12, %cst_13 {dimension_numbers = #tpu.dot_dimension_numbers<[1], [0], [0], [1], [0, 0, 1, 1], [], []>} : vector<16x16xf32>, vector<16x32xf32>, vector<16x32xf32> -> vector<16x32xf32>
    %14 = arith.addf %7, %13 : vector<16x32xf32>
    %c0_14 = arith.constant 0 : index
    %c0_15 = arith.constant 0 : index
    %c1_16 = arith.constant 1 : index
    %c0_17 = arith.constant 0 : index
    %15 = vector.load %arg1[%c0_14, %c0_15, %c1_16, %c0_17] : memref<1x5x5x16xf32, #tpu.memory_space<vmem>>, vector<1x4x4x16xf32>
    %16 = vector.shape_cast %15 : vector<1x4x4x16xf32> to vector<4x4x16xf32>
    %17 = vector.shape_cast %16 : vector<4x4x16xf32> to vector<16x16xf32>
    %c2 = arith.constant 2 : index
    %c0_18 = arith.constant 0 : index
    %c0_19 = arith.constant 0 : index
    %18 = vector.load %arg5[%c2, %c0_18, %c0_19] : memref<9x16x32xf32, #tpu.memory_space<vmem>>, vector<1x16x32xf32>
    %19 = vector.shape_cast %18 : vector<1x16x32xf32> to vector<16x32xf32>
    %cst_20 = arith.constant dense<0.000000e+00> : vector<16x32xf32>
    %20 = tpu.matmul %17, %19, %cst_20 {dimension_numbers = #tpu.dot_dimension_numbers<[1], [0], [0], [1], [0, 0, 1, 1], [], []>} : vector<16x16xf32>, vector<16x32xf32>, vector<16x32xf32> -> vector<16x32xf32>
    %21 = arith.addf %14, %20 : vector<16x32xf32>
    %c0_21 = arith.constant 0 : index
    %c0_22 = arith.constant 0 : index
    %c0_23 = arith.constant 0 : index
    %c0_24 = arith.constant 0 : index
    %22 = vector.load %arg3[%c0_21, %c0_22, %c0_23, %c0_24] : memref<1x5x5x16xf32, #tpu.memory_space<vmem>>, vector<1x4x4x16xf32>
    %23 = vector.shape_cast %22 : vector<1x4x4x16xf32> to vector<4x4x16xf32>
    %24 = vector.shape_cast %23 : vector<4x4x16xf32> to vector<16x16xf32>
    %c3 = arith.constant 3 : index
    %c0_25 = arith.constant 0 : index
    %c0_26 = arith.constant 0 : index
    %25 = vector.load %arg5[%c3, %c0_25, %c0_26] : memref<9x16x32xf32, #tpu.memory_space<vmem>>, vector<1x16x32xf32>
    %26 = vector.shape_cast %25 : vector<1x16x32xf32> to vector<16x32xf32>
    %cst_27 = arith.constant dense<0.000000e+00> : vector<16x32xf32>
    %27 = tpu.matmul %24, %26, %cst_27 {dimension_numbers = #tpu.dot_dimension_numbers<[1], [0], [0], [1], [0, 0, 1, 1], [], []>} : vector<16x16xf32>, vector<16x32xf32>, vector<16x32xf32> -> vector<16x32xf32>
    %28 = arith.addf %21, %27 : vector<16x32xf32>
    %c0_28 = arith.constant 0 : index
    %c0_29 = arith.constant 0 : index
    %c0_30 = arith.constant 0 : index
    %c0_31 = arith.constant 0 : index
    %29 = vector.load %arg4[%c0_28, %c0_29, %c0_30, %c0_31] : memref<1x5x5x16xf32, #tpu.memory_space<vmem>>, vector<1x4x4x16xf32>
    %30 = vector.shape_cast %29 : vector<1x4x4x16xf32> to vector<4x4x16xf32>
    %31 = vector.shape_cast %30 : vector<4x4x16xf32> to vector<16x16xf32>
    %c4 = arith.constant 4 : index
    %c0_32 = arith.constant 0 : index
    %c0_33 = arith.constant 0 : index
    %32 = vector.load %arg5[%c4, %c0_32, %c0_33] : memref<9x16x32xf32, #tpu.memory_space<vmem>>, vector<1x16x32xf32>
    %33 = vector.shape_cast %32 : vector<1x16x32xf32> to vector<16x32xf32>
    %cst_34 = arith.constant dense<0.000000e+00> : vector<16x32xf32>
    %34 = tpu.matmul %31, %33, %cst_34 {dimension_numbers = #tpu.dot_dimension_numbers<[1], [0], [0], [1], [0, 0, 1, 1], [], []>} : vector<16x16xf32>, vector<16x32xf32>, vector<16x32xf32> -> vector<16x32xf32>
    %35 = arith.addf %28, %34 : vector<16x32xf32>
    %c0_35 = arith.constant 0 : index
    %c0_36 = arith.constant 0 : index
    %c1_37 = arith.constant 1 : index
    %c0_38 = arith.constant 0 : index
    %36 = vector.load %arg3[%c0_35, %c0_36, %c1_37, %c0_38] : memref<1x5x5x16xf32, #tpu.memory_space<vmem>>, vector<1x4x4x16xf32>
    %37 = vector.shape_cast %36 : vector<1x4x4x16xf32> to vector<4x4x16xf32>
    %38 = vector.shape_cast %37 : vector<4x4x16xf32> to vector<16x16xf32>
    %c5 = arith.constant 5 : index
    %c0_39 = arith.constant 0 : index
    %c0_40 = arith.constant 0 : index
    %39 = vector.load %arg5[%c5, %c0_39, %c0_40] : memref<9x16x32xf32, #tpu.memory_space<vmem>>, vector<1x16x32xf32>
    %40 = vector.shape_cast %39 : vector<1x16x32xf32> to vector<16x32xf32>
    %cst_41 = arith.constant dense<0.000000e+00> : vector<16x32xf32>
    %41 = tpu.matmul %38, %40, %cst_41 {dimension_numbers = #tpu.dot_dimension_numbers<[1], [0], [0], [1], [0, 0, 1, 1], [], []>} : vector<16x16xf32>, vector<16x32xf32>, vector<16x32xf32> -> vector<16x32xf32>
    %42 = arith.addf %35, %41 : vector<16x32xf32>
    %c0_42 = arith.constant 0 : index
    %c1_43 = arith.constant 1 : index
    %c0_44 = arith.constant 0 : index
    %c0_45 = arith.constant 0 : index
    %43 = vector.load %arg1[%c0_42, %c1_43, %c0_44, %c0_45] : memref<1x5x5x16xf32, #tpu.memory_space<vmem>>, vector<1x4x4x16xf32>
    %44 = vector.shape_cast %43 : vector<1x4x4x16xf32> to vector<4x4x16xf32>
    %45 = vector.shape_cast %44 : vector<4x4x16xf32> to vector<16x16xf32>
    %c6 = arith.constant 6 : index
    %c0_46 = arith.constant 0 : index
    %c0_47 = arith.constant 0 : index
    %46 = vector.load %arg5[%c6, %c0_46, %c0_47] : memref<9x16x32xf32, #tpu.memory_space<vmem>>, vector<1x16x32xf32>
    %47 = vector.shape_cast %46 : vector<1x16x32xf32> to vector<16x32xf32>
    %cst_48 = arith.constant dense<0.000000e+00> : vector<16x32xf32>
    %48 = tpu.matmul %45, %47, %cst_48 {dimension_numbers = #tpu.dot_dimension_numbers<[1], [0], [0], [1], [0, 0, 1, 1], [], []>} : vector<16x16xf32>, vector<16x32xf32>, vector<16x32xf32> -> vector<16x32xf32>
    %49 = arith.addf %42, %48 : vector<16x32xf32>
    %c0_49 = arith.constant 0 : index
    %c1_50 = arith.constant 1 : index
    %c0_51 = arith.constant 0 : index
    %c0_52 = arith.constant 0 : index
    %50 = vector.load %arg2[%c0_49, %c1_50, %c0_51, %c0_52] : memref<1x5x5x16xf32, #tpu.memory_space<vmem>>, vector<1x4x4x16xf32>
    %51 = vector.shape_cast %50 : vector<1x4x4x16xf32> to vector<4x4x16xf32>
    %52 = vector.shape_cast %51 : vector<4x4x16xf32> to vector<16x16xf32>
    %c7 = arith.constant 7 : index
    %c0_53 = arith.constant 0 : index
    %c0_54 = arith.constant 0 : index
    %53 = vector.load %arg5[%c7, %c0_53, %c0_54] : memref<9x16x32xf32, #tpu.memory_space<vmem>>, vector<1x16x32xf32>
    %54 = vector.shape_cast %53 : vector<1x16x32xf32> to vector<16x32xf32>
    %cst_55 = arith.constant dense<0.000000e+00> : vector<16x32xf32>
    %55 = tpu.matmul %52, %54, %cst_55 {dimension_numbers = #tpu.dot_dimension_numbers<[1], [0], [0], [1], [0, 0, 1, 1], [], []>} : vector<16x16xf32>, vector<16x32xf32>, vector<16x32xf32> -> vector<16x32xf32>
    %56 = arith.addf %49, %55 : vector<16x32xf32>
    %c0_56 = arith.constant 0 : index
    %c1_57 = arith.constant 1 : index
    %c1_58 = arith.constant 1 : index
    %c0_59 = arith.constant 0 : index
    %57 = vector.load %arg1[%c0_56, %c1_57, %c1_58, %c0_59] : memref<1x5x5x16xf32, #tpu.memory_space<vmem>>, vector<1x4x4x16xf32>
    %58 = vector.shape_cast %57 : vector<1x4x4x16xf32> to vector<4x4x16xf32>
    %59 = vector.shape_cast %58 : vector<4x4x16xf32> to vector<16x16xf32>
    %c8 = arith.constant 8 : index
    %c0_60 = arith.constant 0 : index
    %c0_61 = arith.constant 0 : index
    %60 = vector.load %arg5[%c8, %c0_60, %c0_61] : memref<9x16x32xf32, #tpu.memory_space<vmem>>, vector<1x16x32xf32>
    %61 = vector.shape_cast %60 : vector<1x16x32xf32> to vector<16x32xf32>
    %cst_62 = arith.constant dense<0.000000e+00> : vector<16x32xf32>
    %62 = tpu.matmul %59, %61, %cst_62 {dimension_numbers = #tpu.dot_dimension_numbers<[1], [0], [0], [1], [0, 0, 1, 1], [], []>} : vector<16x16xf32>, vector<16x32xf32>, vector<16x32xf32> -> vector<16x32xf32>
    %63 = arith.addf %56, %62 : vector<16x32xf32>
    %c0_63 = arith.constant 0 : index
    %c0_64 = arith.constant 0 : index
    %64 = vector.load %arg6[%c0_63, %c0_64] : memref<1x32xf32, #tpu.memory_space<vmem>>, vector<1x32xf32>
    %65 = vector.broadcast %64 : vector<1x32xf32> to vector<16x32xf32>
    %66 = arith.addf %63, %65 : vector<16x32xf32>
    %cst_65 = arith.constant 0.000000e+00 : f32
    %67 = vector.broadcast %cst_65 : f32 to vector<16x32xf32>
    %68 = arith.maximumf %66, %67 : vector<16x32xf32>
    %c0_66 = arith.constant 0 : index
    %c0_67 = arith.constant 0 : index
    %c0_68 = arith.constant 0 : index
    %69 = vector.load %arg7[%c0_66, %c0_67, %c0_68] : memref<1x16x32xf32, #tpu.memory_space<vmem>>, vector<1x16x32xf32>
    %70 = vector.shape_cast %69 : vector<1x16x32xf32> to vector<16x32xf32>
    %71 = vector.shape_cast %68 : vector<16x32xf32> to vector<1x16x32xf32>
    tpu.vector_store %arg7[%c0_66, %c0_67, %c0_68], %71 {strides = array<i32>} : memref<1x16x32xf32, #tpu.memory_space<vmem>>, vector<1x16x32xf32>,
    return
  }
  func.func @transform_0(%arg0: i32) -> (i32, i32, i32, i32) {
    %c0_i32 = arith.constant 0 : i32
    %c0_i32_0 = arith.constant 0 : i32
    %c0_i32_1 = arith.constant 0 : i32
    %c0_i32_2 = arith.constant 0 : i32
    return %arg0, %c0_i32, %c0_i32_0, %c0_i32_1 : i32, i32, i32, i32
  }
  func.func @transform_1(%arg0: i32) -> (i32, i32, i32, i32) {
    %c0_i32 = arith.constant 0 : i32
    %c0_i32_0 = arith.constant 0 : i32
    %c0_i32_1 = arith.constant 0 : i32
    %c0_i32_2 = arith.constant 0 : i32
    return %arg0, %c0_i32, %c0_i32_0, %c0_i32_1 : i32, i32, i32, i32
  }
  func.func @transform_2(%arg0: i32) -> (i32, i32, i32, i32) {
    %c0_i32 = arith.constant 0 : i32
    %c0_i32_0 = arith.constant 0 : i32
    %c0_i32_1 = arith.constant 0 : i32
    %c0_i32_2 = arith.constant 0 : i32
    return %arg0, %c0_i32, %c0_i32_0, %c0_i32_1 : i32, i32, i32, i32
  }
  func.func @transform_3(%arg0: i32) -> (i32, i32, i32, i32) {
    %c0_i32 = arith.constant 0 : i32
    %c0_i32_0 = arith.constant 0 : i32
    %c0_i32_1 = arith.constant 0 : i32
    %c0_i32_2 = arith.constant 0 : i32
    return %arg0, %c0_i32, %c0_i32_0, %c0_i32_1 : i32, i32, i32, i32
  }
  func.func @transform_4(%arg0: i32) -> (i32, i32, i32) {
    %c0_i32 = arith.constant 0 : i32
    %c0_i32_0 = arith.constant 0 : i32
    %c0_i32_1 = arith.constant 0 : i32
    %c0_i32_2 = arith.constant 0 : i32
    return %c0_i32, %c0_i32_0, %c0_i32_1 : i32, i32, i32
  }
  func.func @transform_5(%arg0: i32) -> (i32, i32) {
    %c0_i32 = arith.constant 0 : i32
    %c0_i32_0 = arith.constant 0 : i32
    %c0_i32_1 = arith.constant 0 : i32
    return %c0_i32, %c0_i32_0 : i32, i32
  }
  func.func @transform_6(%arg0: i32) -> (i32, i32, i32) {
    %c0_i32 = arith.constant 0 : i32
    %c0_i32_0 = arith.constant 0 : i32
    %c0_i32_1 = arith.constant 0 : i32
    return %arg0, %c0_i32, %c0_i32_0 : i32, i32, i32
  }
}

module attributes {stable_mosaic.version = 11 : i64} {
  func.func @_conv_kernel(%arg0: i32, %arg1: memref<1x6x6x32xf32, #tpu.memory_space<vmem>>, %arg2: memref<9x32x32xf32, #tpu.memory_space<vmem>>, %arg3: memref<1x32xf32, #tpu.memory_space<vmem>>, %arg4: memref<1x16x32xf32, #tpu.memory_space<vmem>>) attributes {dimension_semantics = [#tpu.dimension_semantics<parallel>], iteration_bounds = array<i64: 2>, scalar_prefetch = 0 : i64, scratch_operands = 0 : i64, tpu.core_type = #tpu.core_type<tc>, window_params = [{transform_indices = @transform_0, window_bounds = array<i64: 1, 6, 6, 32>}, {pipeline_mode = #tpu.pipeline_mode<synchronous>, transform_indices = @transform_1, window_bounds = array<i64: 9, 32, 32>}, {pipeline_mode = #tpu.pipeline_mode<synchronous>, transform_indices = @transform_2, window_bounds = array<i64: 1, 32>}, {transform_indices = @transform_3, window_bounds = array<i64: 1, 16, 32>}]} {
    %cst = arith.constant 0.000000e+00 : f32
    %0 = vector.broadcast %cst : f32 to vector<16x32xf32>
    %c0 = arith.constant 0 : index
    %c0_0 = arith.constant 0 : index
    %c0_1 = arith.constant 0 : index
    %c0_2 = arith.constant 0 : index
    %1 = vector.load %arg1[%c0, %c0_0, %c0_1, %c0_2] : memref<1x6x6x32xf32, #tpu.memory_space<vmem>>, vector<1x4x4x32xf32>
    %2 = vector.shape_cast %1 : vector<1x4x4x32xf32> to vector<4x4x32xf32>
    %3 = vector.shape_cast %2 : vector<4x4x32xf32> to vector<16x32xf32>
    %c0_3 = arith.constant 0 : index
    %c0_4 = arith.constant 0 : index
    %c0_5 = arith.constant 0 : index
    %4 = vector.load %arg2[%c0_3, %c0_4, %c0_5] : memref<9x32x32xf32, #tpu.memory_space<vmem>>, vector<1x32x32xf32>
    %5 = vector.shape_cast %4 : vector<1x32x32xf32> to vector<32x32xf32>
    %cst_6 = arith.constant dense<0.000000e+00> : vector<16x32xf32>
    %6 = tpu.matmul %3, %5, %cst_6 {dimension_numbers = #tpu.dot_dimension_numbers<[1], [0], [0], [1], [0, 0, 1, 1], [], []>} : vector<16x32xf32>, vector<32x32xf32>, vector<16x32xf32> -> vector<16x32xf32>
    %7 = arith.addf %0, %6 : vector<16x32xf32>
    %c0_7 = arith.constant 0 : index
    %c0_8 = arith.constant 0 : index
    %c1 = arith.constant 1 : index
    %c0_9 = arith.constant 0 : index
    %8 = vector.load %arg1[%c0_7, %c0_8, %c1, %c0_9] : memref<1x6x6x32xf32, #tpu.memory_space<vmem>>, vector<1x4x4x32xf32>
    %9 = vector.shape_cast %8 : vector<1x4x4x32xf32> to vector<4x4x32xf32>
    %10 = vector.shape_cast %9 : vector<4x4x32xf32> to vector<16x32xf32>
    %c1_10 = arith.constant 1 : index
    %c0_11 = arith.constant 0 : index
    %c0_12 = arith.constant 0 : index
    %11 = vector.load %arg2[%c1_10, %c0_11, %c0_12] : memref<9x32x32xf32, #tpu.memory_space<vmem>>, vector<1x32x32xf32>
    %12 = vector.shape_cast %11 : vector<1x32x32xf32> to vector<32x32xf32>
    %cst_13 = arith.constant dense<0.000000e+00> : vector<16x32xf32>
    %13 = tpu.matmul %10, %12, %cst_13 {dimension_numbers = #tpu.dot_dimension_numbers<[1], [0], [0], [1], [0, 0, 1, 1], [], []>} : vector<16x32xf32>, vector<32x32xf32>, vector<16x32xf32> -> vector<16x32xf32>
    %14 = arith.addf %7, %13 : vector<16x32xf32>
    %c0_14 = arith.constant 0 : index
    %c0_15 = arith.constant 0 : index
    %c2 = arith.constant 2 : index
    %c0_16 = arith.constant 0 : index
    %15 = vector.load %arg1[%c0_14, %c0_15, %c2, %c0_16] : memref<1x6x6x32xf32, #tpu.memory_space<vmem>>, vector<1x4x4x32xf32>
    %16 = vector.shape_cast %15 : vector<1x4x4x32xf32> to vector<4x4x32xf32>
    %17 = vector.shape_cast %16 : vector<4x4x32xf32> to vector<16x32xf32>
    %c2_17 = arith.constant 2 : index
    %c0_18 = arith.constant 0 : index
    %c0_19 = arith.constant 0 : index
    %18 = vector.load %arg2[%c2_17, %c0_18, %c0_19] : memref<9x32x32xf32, #tpu.memory_space<vmem>>, vector<1x32x32xf32>
    %19 = vector.shape_cast %18 : vector<1x32x32xf32> to vector<32x32xf32>
    %cst_20 = arith.constant dense<0.000000e+00> : vector<16x32xf32>
    %20 = tpu.matmul %17, %19, %cst_20 {dimension_numbers = #tpu.dot_dimension_numbers<[1], [0], [0], [1], [0, 0, 1, 1], [], []>} : vector<16x32xf32>, vector<32x32xf32>, vector<16x32xf32> -> vector<16x32xf32>
    %21 = arith.addf %14, %20 : vector<16x32xf32>
    %c0_21 = arith.constant 0 : index
    %c1_22 = arith.constant 1 : index
    %c0_23 = arith.constant 0 : index
    %c0_24 = arith.constant 0 : index
    %22 = vector.load %arg1[%c0_21, %c1_22, %c0_23, %c0_24] : memref<1x6x6x32xf32, #tpu.memory_space<vmem>>, vector<1x4x4x32xf32>
    %23 = vector.shape_cast %22 : vector<1x4x4x32xf32> to vector<4x4x32xf32>
    %24 = vector.shape_cast %23 : vector<4x4x32xf32> to vector<16x32xf32>
    %c3 = arith.constant 3 : index
    %c0_25 = arith.constant 0 : index
    %c0_26 = arith.constant 0 : index
    %25 = vector.load %arg2[%c3, %c0_25, %c0_26] : memref<9x32x32xf32, #tpu.memory_space<vmem>>, vector<1x32x32xf32>
    %26 = vector.shape_cast %25 : vector<1x32x32xf32> to vector<32x32xf32>
    %cst_27 = arith.constant dense<0.000000e+00> : vector<16x32xf32>
    %27 = tpu.matmul %24, %26, %cst_27 {dimension_numbers = #tpu.dot_dimension_numbers<[1], [0], [0], [1], [0, 0, 1, 1], [], []>} : vector<16x32xf32>, vector<32x32xf32>, vector<16x32xf32> -> vector<16x32xf32>
    %28 = arith.addf %21, %27 : vector<16x32xf32>
    %c0_28 = arith.constant 0 : index
    %c1_29 = arith.constant 1 : index
    %c1_30 = arith.constant 1 : index
    %c0_31 = arith.constant 0 : index
    %29 = vector.load %arg1[%c0_28, %c1_29, %c1_30, %c0_31] : memref<1x6x6x32xf32, #tpu.memory_space<vmem>>, vector<1x4x4x32xf32>
    %30 = vector.shape_cast %29 : vector<1x4x4x32xf32> to vector<4x4x32xf32>
    %31 = vector.shape_cast %30 : vector<4x4x32xf32> to vector<16x32xf32>
    %c4 = arith.constant 4 : index
    %c0_32 = arith.constant 0 : index
    %c0_33 = arith.constant 0 : index
    %32 = vector.load %arg2[%c4, %c0_32, %c0_33] : memref<9x32x32xf32, #tpu.memory_space<vmem>>, vector<1x32x32xf32>
    %33 = vector.shape_cast %32 : vector<1x32x32xf32> to vector<32x32xf32>
    %cst_34 = arith.constant dense<0.000000e+00> : vector<16x32xf32>
    %34 = tpu.matmul %31, %33, %cst_34 {dimension_numbers = #tpu.dot_dimension_numbers<[1], [0], [0], [1], [0, 0, 1, 1], [], []>} : vector<16x32xf32>, vector<32x32xf32>, vector<16x32xf32> -> vector<16x32xf32>
    %35 = arith.addf %28, %34 : vector<16x32xf32>
    %c0_35 = arith.constant 0 : index
    %c1_36 = arith.constant 1 : index
    %c2_37 = arith.constant 2 : index
    %c0_38 = arith.constant 0 : index
    %36 = vector.load %arg1[%c0_35, %c1_36, %c2_37, %c0_38] : memref<1x6x6x32xf32, #tpu.memory_space<vmem>>, vector<1x4x4x32xf32>
    %37 = vector.shape_cast %36 : vector<1x4x4x32xf32> to vector<4x4x32xf32>
    %38 = vector.shape_cast %37 : vector<4x4x32xf32> to vector<16x32xf32>
    %c5 = arith.constant 5 : index
    %c0_39 = arith.constant 0 : index
    %c0_40 = arith.constant 0 : index
    %39 = vector.load %arg2[%c5, %c0_39, %c0_40] : memref<9x32x32xf32, #tpu.memory_space<vmem>>, vector<1x32x32xf32>
    %40 = vector.shape_cast %39 : vector<1x32x32xf32> to vector<32x32xf32>
    %cst_41 = arith.constant dense<0.000000e+00> : vector<16x32xf32>
    %41 = tpu.matmul %38, %40, %cst_41 {dimension_numbers = #tpu.dot_dimension_numbers<[1], [0], [0], [1], [0, 0, 1, 1], [], []>} : vector<16x32xf32>, vector<32x32xf32>, vector<16x32xf32> -> vector<16x32xf32>
    %42 = arith.addf %35, %41 : vector<16x32xf32>
    %c0_42 = arith.constant 0 : index
    %c2_43 = arith.constant 2 : index
    %c0_44 = arith.constant 0 : index
    %c0_45 = arith.constant 0 : index
    %43 = vector.load %arg1[%c0_42, %c2_43, %c0_44, %c0_45] : memref<1x6x6x32xf32, #tpu.memory_space<vmem>>, vector<1x4x4x32xf32>
    %44 = vector.shape_cast %43 : vector<1x4x4x32xf32> to vector<4x4x32xf32>
    %45 = vector.shape_cast %44 : vector<4x4x32xf32> to vector<16x32xf32>
    %c6 = arith.constant 6 : index
    %c0_46 = arith.constant 0 : index
    %c0_47 = arith.constant 0 : index
    %46 = vector.load %arg2[%c6, %c0_46, %c0_47] : memref<9x32x32xf32, #tpu.memory_space<vmem>>, vector<1x32x32xf32>
    %47 = vector.shape_cast %46 : vector<1x32x32xf32> to vector<32x32xf32>
    %cst_48 = arith.constant dense<0.000000e+00> : vector<16x32xf32>
    %48 = tpu.matmul %45, %47, %cst_48 {dimension_numbers = #tpu.dot_dimension_numbers<[1], [0], [0], [1], [0, 0, 1, 1], [], []>} : vector<16x32xf32>, vector<32x32xf32>, vector<16x32xf32> -> vector<16x32xf32>
    %49 = arith.addf %42, %48 : vector<16x32xf32>
    %c0_49 = arith.constant 0 : index
    %c2_50 = arith.constant 2 : index
    %c1_51 = arith.constant 1 : index
    %c0_52 = arith.constant 0 : index
    %50 = vector.load %arg1[%c0_49, %c2_50, %c1_51, %c0_52] : memref<1x6x6x32xf32, #tpu.memory_space<vmem>>, vector<1x4x4x32xf32>
    %51 = vector.shape_cast %50 : vector<1x4x4x32xf32> to vector<4x4x32xf32>
    %52 = vector.shape_cast %51 : vector<4x4x32xf32> to vector<16x32xf32>
    %c7 = arith.constant 7 : index
    %c0_53 = arith.constant 0 : index
    %c0_54 = arith.constant 0 : index
    %53 = vector.load %arg2[%c7, %c0_53, %c0_54] : memref<9x32x32xf32, #tpu.memory_space<vmem>>, vector<1x32x32xf32>
    %54 = vector.shape_cast %53 : vector<1x32x32xf32> to vector<32x32xf32>
    %cst_55 = arith.constant dense<0.000000e+00> : vector<16x32xf32>
    %55 = tpu.matmul %52, %54, %cst_55 {dimension_numbers = #tpu.dot_dimension_numbers<[1], [0], [0], [1], [0, 0, 1, 1], [], []>} : vector<16x32xf32>, vector<32x32xf32>, vector<16x32xf32> -> vector<16x32xf32>
    %56 = arith.addf %49, %55 : vector<16x32xf32>
    %c0_56 = arith.constant 0 : index
    %c2_57 = arith.constant 2 : index
    %c2_58 = arith.constant 2 : index
    %c0_59 = arith.constant 0 : index
    %57 = vector.load %arg1[%c0_56, %c2_57, %c2_58, %c0_59] : memref<1x6x6x32xf32, #tpu.memory_space<vmem>>, vector<1x4x4x32xf32>
    %58 = vector.shape_cast %57 : vector<1x4x4x32xf32> to vector<4x4x32xf32>
    %59 = vector.shape_cast %58 : vector<4x4x32xf32> to vector<16x32xf32>
    %c8 = arith.constant 8 : index
    %c0_60 = arith.constant 0 : index
    %c0_61 = arith.constant 0 : index
    %60 = vector.load %arg2[%c8, %c0_60, %c0_61] : memref<9x32x32xf32, #tpu.memory_space<vmem>>, vector<1x32x32xf32>
    %61 = vector.shape_cast %60 : vector<1x32x32xf32> to vector<32x32xf32>
    %cst_62 = arith.constant dense<0.000000e+00> : vector<16x32xf32>
    %62 = tpu.matmul %59, %61, %cst_62 {dimension_numbers = #tpu.dot_dimension_numbers<[1], [0], [0], [1], [0, 0, 1, 1], [], []>} : vector<16x32xf32>, vector<32x32xf32>, vector<16x32xf32> -> vector<16x32xf32>
    %63 = arith.addf %56, %62 : vector<16x32xf32>
    %c0_63 = arith.constant 0 : index
    %c0_64 = arith.constant 0 : index
    %64 = vector.load %arg3[%c0_63, %c0_64] : memref<1x32xf32, #tpu.memory_space<vmem>>, vector<1x32xf32>
    %65 = vector.broadcast %64 : vector<1x32xf32> to vector<16x32xf32>
    %66 = arith.addf %63, %65 : vector<16x32xf32>
    %cst_65 = arith.constant 0.000000e+00 : f32
    %67 = vector.broadcast %cst_65 : f32 to vector<16x32xf32>
    %68 = arith.maximumf %66, %67 : vector<16x32xf32>
    %c0_66 = arith.constant 0 : index
    %c0_67 = arith.constant 0 : index
    %c0_68 = arith.constant 0 : index
    %69 = vector.load %arg4[%c0_66, %c0_67, %c0_68] : memref<1x16x32xf32, #tpu.memory_space<vmem>>, vector<1x16x32xf32>
    %70 = vector.shape_cast %69 : vector<1x16x32xf32> to vector<16x32xf32>
    %71 = vector.shape_cast %68 : vector<16x32xf32> to vector<1x16x32xf32>
    tpu.vector_store %arg4[%c0_66, %c0_67, %c0_68], %71 {strides = array<i32>} : memref<1x16x32xf32, #tpu.memory_space<vmem>>, vector<1x16x32xf32>,
    return
  }
  func.func @transform_0(%arg0: i32) -> (i32, i32, i32, i32) {
    %c0_i32 = arith.constant 0 : i32
    %c0_i32_0 = arith.constant 0 : i32
    %c0_i32_1 = arith.constant 0 : i32
    %c0_i32_2 = arith.constant 0 : i32
    return %arg0, %c0_i32, %c0_i32_0, %c0_i32_1 : i32, i32, i32, i32
  }
  func.func @transform_1(%arg0: i32) -> (i32, i32, i32) {
    %c0_i32 = arith.constant 0 : i32
    %c0_i32_0 = arith.constant 0 : i32
    %c0_i32_1 = arith.constant 0 : i32
    %c0_i32_2 = arith.constant 0 : i32
    return %c0_i32, %c0_i32_0, %c0_i32_1 : i32, i32, i32
  }
  func.func @transform_2(%arg0: i32) -> (i32, i32) {
    %c0_i32 = arith.constant 0 : i32
    %c0_i32_0 = arith.constant 0 : i32
    %c0_i32_1 = arith.constant 0 : i32
    return %c0_i32, %c0_i32_0 : i32, i32
  }
  func.func @transform_3(%arg0: i32) -> (i32, i32, i32) {
    %c0_i32 = arith.constant 0 : i32
    %c0_i32_0 = arith.constant 0 : i32
    %c0_i32_1 = arith.constant 0 : i32
    return %arg0, %c0_i32, %c0_i32_0 : i32, i32, i32
  }
}

module attributes {stable_mosaic.version = 11 : i64} {
  func.func @_conv_kernel(%arg0: i32, %arg1: memref<1x11x11x32xf32, #tpu.memory_space<vmem>>, %arg2: memref<16x32x5xf32, #tpu.memory_space<vmem>>, %arg3: memref<1x5xf32, #tpu.memory_space<vmem>>, %arg4: memref<1x64x5xf32, #tpu.memory_space<vmem>>) attributes {dimension_semantics = [#tpu.dimension_semantics<parallel>], iteration_bounds = array<i64: 2>, scalar_prefetch = 0 : i64, scratch_operands = 0 : i64, tpu.core_type = #tpu.core_type<tc>, window_params = [{transform_indices = @transform_0, window_bounds = array<i64: 1, 11, 11, 32>}, {pipeline_mode = #tpu.pipeline_mode<synchronous>, transform_indices = @transform_1, window_bounds = array<i64: 16, 32, 5>}, {pipeline_mode = #tpu.pipeline_mode<synchronous>, transform_indices = @transform_2, window_bounds = array<i64: 1, 5>}, {transform_indices = @transform_3, window_bounds = array<i64: 1, 64, 5>}]} {
    %cst = arith.constant 0.000000e+00 : f32
    %0 = vector.broadcast %cst : f32 to vector<64x5xf32>
    %c0 = arith.constant 0 : index
    %c0_0 = arith.constant 0 : index
    %c0_1 = arith.constant 0 : index
    %c0_2 = arith.constant 0 : index
    %1 = vector.load %arg1[%c0, %c0_0, %c0_1, %c0_2] : memref<1x11x11x32xf32, #tpu.memory_space<vmem>>, vector<1x8x8x32xf32>
    %2 = vector.shape_cast %1 : vector<1x8x8x32xf32> to vector<8x8x32xf32>
    %3 = vector.shape_cast %2 : vector<8x8x32xf32> to vector<64x32xf32>
    %c0_3 = arith.constant 0 : index
    %c0_4 = arith.constant 0 : index
    %c0_5 = arith.constant 0 : index
    %4 = vector.load %arg2[%c0_3, %c0_4, %c0_5] : memref<16x32x5xf32, #tpu.memory_space<vmem>>, vector<1x32x5xf32>
    %5 = vector.shape_cast %4 : vector<1x32x5xf32> to vector<32x5xf32>
    %cst_6 = arith.constant dense<0.000000e+00> : vector<64x5xf32>
    %6 = tpu.matmul %3, %5, %cst_6 {dimension_numbers = #tpu.dot_dimension_numbers<[1], [0], [0], [1], [0, 0, 1, 1], [], []>} : vector<64x32xf32>, vector<32x5xf32>, vector<64x5xf32> -> vector<64x5xf32>
    %7 = arith.addf %0, %6 : vector<64x5xf32>
    %c0_7 = arith.constant 0 : index
    %c0_8 = arith.constant 0 : index
    %c1 = arith.constant 1 : index
    %c0_9 = arith.constant 0 : index
    %8 = vector.load %arg1[%c0_7, %c0_8, %c1, %c0_9] : memref<1x11x11x32xf32, #tpu.memory_space<vmem>>, vector<1x8x8x32xf32>
    %9 = vector.shape_cast %8 : vector<1x8x8x32xf32> to vector<8x8x32xf32>
    %10 = vector.shape_cast %9 : vector<8x8x32xf32> to vector<64x32xf32>
    %c1_10 = arith.constant 1 : index
    %c0_11 = arith.constant 0 : index
    %c0_12 = arith.constant 0 : index
    %11 = vector.load %arg2[%c1_10, %c0_11, %c0_12] : memref<16x32x5xf32, #tpu.memory_space<vmem>>, vector<1x32x5xf32>
    %12 = vector.shape_cast %11 : vector<1x32x5xf32> to vector<32x5xf32>
    %cst_13 = arith.constant dense<0.000000e+00> : vector<64x5xf32>
    %13 = tpu.matmul %10, %12, %cst_13 {dimension_numbers = #tpu.dot_dimension_numbers<[1], [0], [0], [1], [0, 0, 1, 1], [], []>} : vector<64x32xf32>, vector<32x5xf32>, vector<64x5xf32> -> vector<64x5xf32>
    %14 = arith.addf %7, %13 : vector<64x5xf32>
    %c0_14 = arith.constant 0 : index
    %c0_15 = arith.constant 0 : index
    %c2 = arith.constant 2 : index
    %c0_16 = arith.constant 0 : index
    %15 = vector.load %arg1[%c0_14, %c0_15, %c2, %c0_16] : memref<1x11x11x32xf32, #tpu.memory_space<vmem>>, vector<1x8x8x32xf32>
    %16 = vector.shape_cast %15 : vector<1x8x8x32xf32> to vector<8x8x32xf32>
    %17 = vector.shape_cast %16 : vector<8x8x32xf32> to vector<64x32xf32>
    %c2_17 = arith.constant 2 : index
    %c0_18 = arith.constant 0 : index
    %c0_19 = arith.constant 0 : index
    %18 = vector.load %arg2[%c2_17, %c0_18, %c0_19] : memref<16x32x5xf32, #tpu.memory_space<vmem>>, vector<1x32x5xf32>
    %19 = vector.shape_cast %18 : vector<1x32x5xf32> to vector<32x5xf32>
    %cst_20 = arith.constant dense<0.000000e+00> : vector<64x5xf32>
    %20 = tpu.matmul %17, %19, %cst_20 {dimension_numbers = #tpu.dot_dimension_numbers<[1], [0], [0], [1], [0, 0, 1, 1], [], []>} : vector<64x32xf32>, vector<32x5xf32>, vector<64x5xf32> -> vector<64x5xf32>
    %21 = arith.addf %14, %20 : vector<64x5xf32>
    %c0_21 = arith.constant 0 : index
    %c0_22 = arith.constant 0 : index
    %c3 = arith.constant 3 : index
    %c0_23 = arith.constant 0 : index
    %22 = vector.load %arg1[%c0_21, %c0_22, %c3, %c0_23] : memref<1x11x11x32xf32, #tpu.memory_space<vmem>>, vector<1x8x8x32xf32>
    %23 = vector.shape_cast %22 : vector<1x8x8x32xf32> to vector<8x8x32xf32>
    %24 = vector.shape_cast %23 : vector<8x8x32xf32> to vector<64x32xf32>
    %c3_24 = arith.constant 3 : index
    %c0_25 = arith.constant 0 : index
    %c0_26 = arith.constant 0 : index
    %25 = vector.load %arg2[%c3_24, %c0_25, %c0_26] : memref<16x32x5xf32, #tpu.memory_space<vmem>>, vector<1x32x5xf32>
    %26 = vector.shape_cast %25 : vector<1x32x5xf32> to vector<32x5xf32>
    %cst_27 = arith.constant dense<0.000000e+00> : vector<64x5xf32>
    %27 = tpu.matmul %24, %26, %cst_27 {dimension_numbers = #tpu.dot_dimension_numbers<[1], [0], [0], [1], [0, 0, 1, 1], [], []>} : vector<64x32xf32>, vector<32x5xf32>, vector<64x5xf32> -> vector<64x5xf32>
    %28 = arith.addf %21, %27 : vector<64x5xf32>
    %c0_28 = arith.constant 0 : index
    %c1_29 = arith.constant 1 : index
    %c0_30 = arith.constant 0 : index
    %c0_31 = arith.constant 0 : index
    %29 = vector.load %arg1[%c0_28, %c1_29, %c0_30, %c0_31] : memref<1x11x11x32xf32, #tpu.memory_space<vmem>>, vector<1x8x8x32xf32>
    %30 = vector.shape_cast %29 : vector<1x8x8x32xf32> to vector<8x8x32xf32>
    %31 = vector.shape_cast %30 : vector<8x8x32xf32> to vector<64x32xf32>
    %c4 = arith.constant 4 : index
    %c0_32 = arith.constant 0 : index
    %c0_33 = arith.constant 0 : index
    %32 = vector.load %arg2[%c4, %c0_32, %c0_33] : memref<16x32x5xf32, #tpu.memory_space<vmem>>, vector<1x32x5xf32>
    %33 = vector.shape_cast %32 : vector<1x32x5xf32> to vector<32x5xf32>
    %cst_34 = arith.constant dense<0.000000e+00> : vector<64x5xf32>
    %34 = tpu.matmul %31, %33, %cst_34 {dimension_numbers = #tpu.dot_dimension_numbers<[1], [0], [0], [1], [0, 0, 1, 1], [], []>} : vector<64x32xf32>, vector<32x5xf32>, vector<64x5xf32> -> vector<64x5xf32>
    %35 = arith.addf %28, %34 : vector<64x5xf32>
    %c0_35 = arith.constant 0 : index
    %c1_36 = arith.constant 1 : index
    %c1_37 = arith.constant 1 : index
    %c0_38 = arith.constant 0 : index
    %36 = vector.load %arg1[%c0_35, %c1_36, %c1_37, %c0_38] : memref<1x11x11x32xf32, #tpu.memory_space<vmem>>, vector<1x8x8x32xf32>
    %37 = vector.shape_cast %36 : vector<1x8x8x32xf32> to vector<8x8x32xf32>
    %38 = vector.shape_cast %37 : vector<8x8x32xf32> to vector<64x32xf32>
    %c5 = arith.constant 5 : index
    %c0_39 = arith.constant 0 : index
    %c0_40 = arith.constant 0 : index
    %39 = vector.load %arg2[%c5, %c0_39, %c0_40] : memref<16x32x5xf32, #tpu.memory_space<vmem>>, vector<1x32x5xf32>
    %40 = vector.shape_cast %39 : vector<1x32x5xf32> to vector<32x5xf32>
    %cst_41 = arith.constant dense<0.000000e+00> : vector<64x5xf32>
    %41 = tpu.matmul %38, %40, %cst_41 {dimension_numbers = #tpu.dot_dimension_numbers<[1], [0], [0], [1], [0, 0, 1, 1], [], []>} : vector<64x32xf32>, vector<32x5xf32>, vector<64x5xf32> -> vector<64x5xf32>
    %42 = arith.addf %35, %41 : vector<64x5xf32>
    %c0_42 = arith.constant 0 : index
    %c1_43 = arith.constant 1 : index
    %c2_44 = arith.constant 2 : index
    %c0_45 = arith.constant 0 : index
    %43 = vector.load %arg1[%c0_42, %c1_43, %c2_44, %c0_45] : memref<1x11x11x32xf32, #tpu.memory_space<vmem>>, vector<1x8x8x32xf32>
    %44 = vector.shape_cast %43 : vector<1x8x8x32xf32> to vector<8x8x32xf32>
    %45 = vector.shape_cast %44 : vector<8x8x32xf32> to vector<64x32xf32>
    %c6 = arith.constant 6 : index
    %c0_46 = arith.constant 0 : index
    %c0_47 = arith.constant 0 : index
    %46 = vector.load %arg2[%c6, %c0_46, %c0_47] : memref<16x32x5xf32, #tpu.memory_space<vmem>>, vector<1x32x5xf32>
    %47 = vector.shape_cast %46 : vector<1x32x5xf32> to vector<32x5xf32>
    %cst_48 = arith.constant dense<0.000000e+00> : vector<64x5xf32>
    %48 = tpu.matmul %45, %47, %cst_48 {dimension_numbers = #tpu.dot_dimension_numbers<[1], [0], [0], [1], [0, 0, 1, 1], [], []>} : vector<64x32xf32>, vector<32x5xf32>, vector<64x5xf32> -> vector<64x5xf32>
    %49 = arith.addf %42, %48 : vector<64x5xf32>
    %c0_49 = arith.constant 0 : index
    %c1_50 = arith.constant 1 : index
    %c3_51 = arith.constant 3 : index
    %c0_52 = arith.constant 0 : index
    %50 = vector.load %arg1[%c0_49, %c1_50, %c3_51, %c0_52] : memref<1x11x11x32xf32, #tpu.memory_space<vmem>>, vector<1x8x8x32xf32>
    %51 = vector.shape_cast %50 : vector<1x8x8x32xf32> to vector<8x8x32xf32>
    %52 = vector.shape_cast %51 : vector<8x8x32xf32> to vector<64x32xf32>
    %c7 = arith.constant 7 : index
    %c0_53 = arith.constant 0 : index
    %c0_54 = arith.constant 0 : index
    %53 = vector.load %arg2[%c7, %c0_53, %c0_54] : memref<16x32x5xf32, #tpu.memory_space<vmem>>, vector<1x32x5xf32>
    %54 = vector.shape_cast %53 : vector<1x32x5xf32> to vector<32x5xf32>
    %cst_55 = arith.constant dense<0.000000e+00> : vector<64x5xf32>
    %55 = tpu.matmul %52, %54, %cst_55 {dimension_numbers = #tpu.dot_dimension_numbers<[1], [0], [0], [1], [0, 0, 1, 1], [], []>} : vector<64x32xf32>, vector<32x5xf32>, vector<64x5xf32> -> vector<64x5xf32>
    %56 = arith.addf %49, %55 : vector<64x5xf32>
    %c0_56 = arith.constant 0 : index
    %c2_57 = arith.constant 2 : index
    %c0_58 = arith.constant 0 : index
    %c0_59 = arith.constant 0 : index
    %57 = vector.load %arg1[%c0_56, %c2_57, %c0_58, %c0_59] : memref<1x11x11x32xf32, #tpu.memory_space<vmem>>, vector<1x8x8x32xf32>
    %58 = vector.shape_cast %57 : vector<1x8x8x32xf32> to vector<8x8x32xf32>
    %59 = vector.shape_cast %58 : vector<8x8x32xf32> to vector<64x32xf32>
    %c8 = arith.constant 8 : index
    %c0_60 = arith.constant 0 : index
    %c0_61 = arith.constant 0 : index
    %60 = vector.load %arg2[%c8, %c0_60, %c0_61] : memref<16x32x5xf32, #tpu.memory_space<vmem>>, vector<1x32x5xf32>
    %61 = vector.shape_cast %60 : vector<1x32x5xf32> to vector<32x5xf32>
    %cst_62 = arith.constant dense<0.000000e+00> : vector<64x5xf32>
    %62 = tpu.matmul %59, %61, %cst_62 {dimension_numbers = #tpu.dot_dimension_numbers<[1], [0], [0], [1], [0, 0, 1, 1], [], []>} : vector<64x32xf32>, vector<32x5xf32>, vector<64x5xf32> -> vector<64x5xf32>
    %63 = arith.addf %56, %62 : vector<64x5xf32>
    %c0_63 = arith.constant 0 : index
    %c2_64 = arith.constant 2 : index
    %c1_65 = arith.constant 1 : index
    %c0_66 = arith.constant 0 : index
    %64 = vector.load %arg1[%c0_63, %c2_64, %c1_65, %c0_66] : memref<1x11x11x32xf32, #tpu.memory_space<vmem>>, vector<1x8x8x32xf32>
    %65 = vector.shape_cast %64 : vector<1x8x8x32xf32> to vector<8x8x32xf32>
    %66 = vector.shape_cast %65 : vector<8x8x32xf32> to vector<64x32xf32>
    %c9 = arith.constant 9 : index
    %c0_67 = arith.constant 0 : index
    %c0_68 = arith.constant 0 : index
    %67 = vector.load %arg2[%c9, %c0_67, %c0_68] : memref<16x32x5xf32, #tpu.memory_space<vmem>>, vector<1x32x5xf32>
    %68 = vector.shape_cast %67 : vector<1x32x5xf32> to vector<32x5xf32>
    %cst_69 = arith.constant dense<0.000000e+00> : vector<64x5xf32>
    %69 = tpu.matmul %66, %68, %cst_69 {dimension_numbers = #tpu.dot_dimension_numbers<[1], [0], [0], [1], [0, 0, 1, 1], [], []>} : vector<64x32xf32>, vector<32x5xf32>, vector<64x5xf32> -> vector<64x5xf32>
    %70 = arith.addf %63, %69 : vector<64x5xf32>
    %c0_70 = arith.constant 0 : index
    %c2_71 = arith.constant 2 : index
    %c2_72 = arith.constant 2 : index
    %c0_73 = arith.constant 0 : index
    %71 = vector.load %arg1[%c0_70, %c2_71, %c2_72, %c0_73] : memref<1x11x11x32xf32, #tpu.memory_space<vmem>>, vector<1x8x8x32xf32>
    %72 = vector.shape_cast %71 : vector<1x8x8x32xf32> to vector<8x8x32xf32>
    %73 = vector.shape_cast %72 : vector<8x8x32xf32> to vector<64x32xf32>
    %c10 = arith.constant 10 : index
    %c0_74 = arith.constant 0 : index
    %c0_75 = arith.constant 0 : index
    %74 = vector.load %arg2[%c10, %c0_74, %c0_75] : memref<16x32x5xf32, #tpu.memory_space<vmem>>, vector<1x32x5xf32>
    %75 = vector.shape_cast %74 : vector<1x32x5xf32> to vector<32x5xf32>
    %cst_76 = arith.constant dense<0.000000e+00> : vector<64x5xf32>
    %76 = tpu.matmul %73, %75, %cst_76 {dimension_numbers = #tpu.dot_dimension_numbers<[1], [0], [0], [1], [0, 0, 1, 1], [], []>} : vector<64x32xf32>, vector<32x5xf32>, vector<64x5xf32> -> vector<64x5xf32>
    %77 = arith.addf %70, %76 : vector<64x5xf32>
    %c0_77 = arith.constant 0 : index
    %c2_78 = arith.constant 2 : index
    %c3_79 = arith.constant 3 : index
    %c0_80 = arith.constant 0 : index
    %78 = vector.load %arg1[%c0_77, %c2_78, %c3_79, %c0_80] : memref<1x11x11x32xf32, #tpu.memory_space<vmem>>, vector<1x8x8x32xf32>
    %79 = vector.shape_cast %78 : vector<1x8x8x32xf32> to vector<8x8x32xf32>
    %80 = vector.shape_cast %79 : vector<8x8x32xf32> to vector<64x32xf32>
    %c11 = arith.constant 11 : index
    %c0_81 = arith.constant 0 : index
    %c0_82 = arith.constant 0 : index
    %81 = vector.load %arg2[%c11, %c0_81, %c0_82] : memref<16x32x5xf32, #tpu.memory_space<vmem>>, vector<1x32x5xf32>
    %82 = vector.shape_cast %81 : vector<1x32x5xf32> to vector<32x5xf32>
    %cst_83 = arith.constant dense<0.000000e+00> : vector<64x5xf32>
    %83 = tpu.matmul %80, %82, %cst_83 {dimension_numbers = #tpu.dot_dimension_numbers<[1], [0], [0], [1], [0, 0, 1, 1], [], []>} : vector<64x32xf32>, vector<32x5xf32>, vector<64x5xf32> -> vector<64x5xf32>
    %84 = arith.addf %77, %83 : vector<64x5xf32>
    %c0_84 = arith.constant 0 : index
    %c3_85 = arith.constant 3 : index
    %c0_86 = arith.constant 0 : index
    %c0_87 = arith.constant 0 : index
    %85 = vector.load %arg1[%c0_84, %c3_85, %c0_86, %c0_87] : memref<1x11x11x32xf32, #tpu.memory_space<vmem>>, vector<1x8x8x32xf32>
    %86 = vector.shape_cast %85 : vector<1x8x8x32xf32> to vector<8x8x32xf32>
    %87 = vector.shape_cast %86 : vector<8x8x32xf32> to vector<64x32xf32>
    %c12 = arith.constant 12 : index
    %c0_88 = arith.constant 0 : index
    %c0_89 = arith.constant 0 : index
    %88 = vector.load %arg2[%c12, %c0_88, %c0_89] : memref<16x32x5xf32, #tpu.memory_space<vmem>>, vector<1x32x5xf32>
    %89 = vector.shape_cast %88 : vector<1x32x5xf32> to vector<32x5xf32>
    %cst_90 = arith.constant dense<0.000000e+00> : vector<64x5xf32>
    %90 = tpu.matmul %87, %89, %cst_90 {dimension_numbers = #tpu.dot_dimension_numbers<[1], [0], [0], [1], [0, 0, 1, 1], [], []>} : vector<64x32xf32>, vector<32x5xf32>, vector<64x5xf32> -> vector<64x5xf32>
    %91 = arith.addf %84, %90 : vector<64x5xf32>
    %c0_91 = arith.constant 0 : index
    %c3_92 = arith.constant 3 : index
    %c1_93 = arith.constant 1 : index
    %c0_94 = arith.constant 0 : index
    %92 = vector.load %arg1[%c0_91, %c3_92, %c1_93, %c0_94] : memref<1x11x11x32xf32, #tpu.memory_space<vmem>>, vector<1x8x8x32xf32>
    %93 = vector.shape_cast %92 : vector<1x8x8x32xf32> to vector<8x8x32xf32>
    %94 = vector.shape_cast %93 : vector<8x8x32xf32> to vector<64x32xf32>
    %c13 = arith.constant 13 : index
    %c0_95 = arith.constant 0 : index
    %c0_96 = arith.constant 0 : index
    %95 = vector.load %arg2[%c13, %c0_95, %c0_96] : memref<16x32x5xf32, #tpu.memory_space<vmem>>, vector<1x32x5xf32>
    %96 = vector.shape_cast %95 : vector<1x32x5xf32> to vector<32x5xf32>
    %cst_97 = arith.constant dense<0.000000e+00> : vector<64x5xf32>
    %97 = tpu.matmul %94, %96, %cst_97 {dimension_numbers = #tpu.dot_dimension_numbers<[1], [0], [0], [1], [0, 0, 1, 1], [], []>} : vector<64x32xf32>, vector<32x5xf32>, vector<64x5xf32> -> vector<64x5xf32>
    %98 = arith.addf %91, %97 : vector<64x5xf32>
    %c0_98 = arith.constant 0 : index
    %c3_99 = arith.constant 3 : index
    %c2_100 = arith.constant 2 : index
    %c0_101 = arith.constant 0 : index
    %99 = vector.load %arg1[%c0_98, %c3_99, %c2_100, %c0_101] : memref<1x11x11x32xf32, #tpu.memory_space<vmem>>, vector<1x8x8x32xf32>
    %100 = vector.shape_cast %99 : vector<1x8x8x32xf32> to vector<8x8x32xf32>
    %101 = vector.shape_cast %100 : vector<8x8x32xf32> to vector<64x32xf32>
    %c14 = arith.constant 14 : index
    %c0_102 = arith.constant 0 : index
    %c0_103 = arith.constant 0 : index
    %102 = vector.load %arg2[%c14, %c0_102, %c0_103] : memref<16x32x5xf32, #tpu.memory_space<vmem>>, vector<1x32x5xf32>
    %103 = vector.shape_cast %102 : vector<1x32x5xf32> to vector<32x5xf32>
    %cst_104 = arith.constant dense<0.000000e+00> : vector<64x5xf32>
    %104 = tpu.matmul %101, %103, %cst_104 {dimension_numbers = #tpu.dot_dimension_numbers<[1], [0], [0], [1], [0, 0, 1, 1], [], []>} : vector<64x32xf32>, vector<32x5xf32>, vector<64x5xf32> -> vector<64x5xf32>
    %105 = arith.addf %98, %104 : vector<64x5xf32>
    %c0_105 = arith.constant 0 : index
    %c3_106 = arith.constant 3 : index
    %c3_107 = arith.constant 3 : index
    %c0_108 = arith.constant 0 : index
    %106 = vector.load %arg1[%c0_105, %c3_106, %c3_107, %c0_108] : memref<1x11x11x32xf32, #tpu.memory_space<vmem>>, vector<1x8x8x32xf32>
    %107 = vector.shape_cast %106 : vector<1x8x8x32xf32> to vector<8x8x32xf32>
    %108 = vector.shape_cast %107 : vector<8x8x32xf32> to vector<64x32xf32>
    %c15 = arith.constant 15 : index
    %c0_109 = arith.constant 0 : index
    %c0_110 = arith.constant 0 : index
    %109 = vector.load %arg2[%c15, %c0_109, %c0_110] : memref<16x32x5xf32, #tpu.memory_space<vmem>>, vector<1x32x5xf32>
    %110 = vector.shape_cast %109 : vector<1x32x5xf32> to vector<32x5xf32>
    %cst_111 = arith.constant dense<0.000000e+00> : vector<64x5xf32>
    %111 = tpu.matmul %108, %110, %cst_111 {dimension_numbers = #tpu.dot_dimension_numbers<[1], [0], [0], [1], [0, 0, 1, 1], [], []>} : vector<64x32xf32>, vector<32x5xf32>, vector<64x5xf32> -> vector<64x5xf32>
    %112 = arith.addf %105, %111 : vector<64x5xf32>
    %c0_112 = arith.constant 0 : index
    %c0_113 = arith.constant 0 : index
    %113 = vector.load %arg3[%c0_112, %c0_113] : memref<1x5xf32, #tpu.memory_space<vmem>>, vector<1x5xf32>
    %114 = vector.broadcast %113 : vector<1x5xf32> to vector<64x5xf32>
    %115 = arith.addf %112, %114 : vector<64x5xf32>
    %c0_114 = arith.constant 0 : index
    %c0_115 = arith.constant 0 : index
    %c0_116 = arith.constant 0 : index
    %116 = vector.load %arg4[%c0_114, %c0_115, %c0_116] : memref<1x64x5xf32, #tpu.memory_space<vmem>>, vector<1x64x5xf32>
    %117 = vector.shape_cast %116 : vector<1x64x5xf32> to vector<64x5xf32>
    %118 = vector.shape_cast %115 : vector<64x5xf32> to vector<1x64x5xf32>
    tpu.vector_store %arg4[%c0_114, %c0_115, %c0_116], %118 {strides = array<i32>} : memref<1x64x5xf32, #tpu.memory_space<vmem>>, vector<1x64x5xf32>,
    return
  }
  func.func @transform_0(%arg0: i32) -> (i32, i32, i32, i32) {
    %c0_i32 = arith.constant 0 : i32
    %c0_i32_0 = arith.constant 0 : i32
    %c0_i32_1 = arith.constant 0 : i32
    %c0_i32_2 = arith.constant 0 : i32
    return %arg0, %c0_i32, %c0_i32_0, %c0_i32_1 : i32, i32, i32, i32
  }
  func.func @transform_1(%arg0: i32) -> (i32, i32, i32) {
    %c0_i32 = arith.constant 0 : i32
    %c0_i32_0 = arith.constant 0 : i32
    %c0_i32_1 = arith.constant 0 : i32
    %c0_i32_2 = arith.constant 0 : i32
    return %c0_i32, %c0_i32_0, %c0_i32_1 : i32, i32, i32
  }
  func.func @transform_2(%arg0: i32) -> (i32, i32) {
    %c0_i32 = arith.constant 0 : i32
    %c0_i32_0 = arith.constant 0 : i32
    %c0_i32_1 = arith.constant 0 : i32
    return %c0_i32, %c0_i32_0 : i32, i32
  }
  func.func @transform_3(%arg0: i32) -> (i32, i32, i32) {
    %c0_i32 = arith.constant 0 : i32
    %c0_i32_0 = arith.constant 0 : i32
    %c0_i32_1 = arith.constant 0 : i32
    return %arg0, %c0_i32, %c0_i32_0 : i32, i32, i32
  }
}

</mosaic_0001>

<bundles_post_ra>
// kernel: if_block_forward.12
= control target key start
LH: loop header
LB: loop body
LE: loop exit
PB: predicated region body
PF: predicated region fallthrough
CT: control target
= control target key end

     0   :  { %s1543_s21 = smov 0   ;;  %s1670_s0 = inlined_call_operand.vmem [shape: f32[2,5,5,16], index: 0, kind: input, shape index: {}]   ;;  %s1671_s1 = inlined_call_operand.vmem [shape: f32[2,5,5,16], index: 1, kind: input, shape index: {}]   ;;  %s1672_s2 = inlined_call_operand.vmem [shape: f32[2,5,5,16], index: 2, kind: input, shape index: {}]   ;;  %s1673_s3 = inlined_call_operand.vmem [shape: f32[2,5,5,16], index: 3, kind: input, shape index: {}]   ;;  %s1674_s4 = inlined_call_operand.vmem [shape: f32[9,16,32], index: 4, kind: input, shape index: {}]   ;;  %s1675_s5 = inlined_call_operand.vmem [shape: f32[1,32], index: 5, kind: input, shape index: {}]   ;;  %s1676_s6 = inlined_call_operand.vmem [shape: f32[2,16,32], index: 6, kind: output, shape index: {}]  }
   0x1 LB: > { %s1261_s22 = sadd.s32 4294967295, %s1506_s21   ;;  %p1265_p0 = scmp.ge.s32.totalorder %s1506_s21, 1  ;;  %s1506_s21 = sphi %s1543_s21, %s16_s21  }
   0x2   : > { %p242_p1 = scmp.lt.s32.totalorder %s1506_s21, 3 }
   0x4   : > { %p243_p2 = pnand %p1265_p0, %p242_p1 }
   0x5   : > { %v1286_v0 = vld [vmem:[%s1674_s4 + $0x40] sm:$0xff] (!%p243_p2)  ;;  %v1287_v1 = vld [vmem:[%s1674_s4 + $0x48] sm:$0xff] (!%p243_p2)  ;;  %v1272_v2 = vld [vmem:[%s1674_s4 + $0x10] sm:$0xff] (!%p243_p2)  ;;  %p287_p3 = scmp.lt.s32.totalorder (!%p243_p2), %s1261_s22, 1  ;;  %vm331_vm0 = vcmask (!%p243_p2), 130048   ;;  %vm1167_vm1 = vcmask (!%p243_p2), 261120  }
   0x6   : > { %246 = sbr.rel (%p243_p2) target bundleno = 272 (0x110), region = 44  ;;  %v1437_v3 = vpack.c.bf16 (!%p243_p2), %v1287_v1, %v1286_v0  ;;  %v1273_v4 = vld [vmem:[%s1674_s4 + $0x18] sm:$0xff] (!%p243_p2)  ;;  %v1290_v5 = vld [vmem:[%s1674_s4 + $0x50] sm:$0xff] (!%p243_p2)  ;;  %v316_v9 = vld [vmem:[%s1674_s4] sm:$0xff] (!%p243_p2) }
   0x7   : > { %v1291_v6 = vld [vmem:[%s1674_s4 + $0x58] sm:$0xff] (!%p243_p2)  ;;  %v1421_v7 = vpack.c.bf16 (!%p243_p2), %v1273_v4, %v1272_v2  ;;  %v317_v10 = vld [vmem:[%s1674_s4 + $0x8] sm:$0xff] (!%p243_p2)  ;;  %v1298_v12 = vld [vmem:[%s1674_s4 + $0x60] sm:$0xff] (!%p243_p2) }
   0x8   : > { %v1441_v8 = vpack.c.bf16 (!%p243_p2), %v1291_v6, %v1290_v5  ;;  %1438 = vmatprep.subr.bf16.mxu0 (!%p243_p2), %v1437_v3  ;;  %v1425_v11 = vpack.c.bf16 (!%p243_p2), %v317_v10, %v316_v9  ;;  %v1299_v13 = vld [vmem:[%s1674_s4 + $0x68] sm:$0xff] (!%p243_p2)  ;;  %v1278_v14 = vld [vmem:[%s1674_s4 + $0x20] sm:$0xff] (!%p243_p2)  ;;  %v1306_v24 = vld [vmem:[%s1674_s4 + $0x70] sm:$0xff] (!%p243_p2) }
   0x9   : > { %1422 = vmatprep.subr.bf16.mxu1 (!%p243_p2), %v1421_v7  ;;  %1440 = vmatpush3.bf16.msra.mxu0 (!%p243_p2), %v1437_v3  ;;  %v1279_v15 = vld [vmem:[%s1674_s4 + $0x28] sm:$0xff] (!%p243_p2)  ;;  %v1445_v20 = vpack.c.bf16 (!%p243_p2), %v1299_v13, %v1298_v12  ;;  %v1307_v25 = vld [vmem:[%s1674_s4 + $0x78] sm:$0xff] (!%p243_p2)  ;;  %v1282_v26 = vld [vmem:[%s1674_s4 + $0x30] sm:$0xff] (!%p243_p2) }
   0xa   : > { %1424 = vmatpush3.bf16.msra.mxu1 (!%p243_p2), %v1421_v7  ;;  %1442 = vmatprep.subr.bf16.mxu0 (!%p243_p2), %v1441_v8  ;;  %v1429_v22 = vpack.c.bf16 (!%p243_p2), %v1279_v15, %v1278_v14  ;;  %v1283_v27 = vld [vmem:[%s1674_s4 + $0x38] sm:$0xff] (!%p243_p2)  ;;  %v1449_v32 = vpack.c.bf16 (!%p243_p2), %v1307_v25, %v1306_v24  ;;  %v1314_v34 = vld [vmem:[%s1674_s4 + $0x80] sm:$0xff] (!%p243_p2)  ;;  %v1315_v35 = vld [vmem:[%s1674_s4 + $0x88] sm:$0xff] (!%p243_p2) }
   0xb   : > { %1426 = vmatprep.subr.bf16.mxu1 (!%p243_p2), %v1425_v11  ;;  %v1433_v33 = vpack.c.bf16 (!%p243_p2), %v1283_v27, %v1282_v26  ;;  %v1453_v40 = vpack.c.bf16 (!%p243_p2), %v1315_v35, %v1314_v34  ;;  %v1318_v48 = vld [vmem:[%s1675_s5] ss:$0 sm:$0xff] (!%p243_p2) }
   0xd   : > { %s1678_s22 = smov (!%p287_p3, %s1261_s22), 1 }
   0xe   : > { %s1473_s15 = smul.u32 40, %s1678_s22 }
  0x10   : > { %s1584_s20 = scalar_lea.vmem %s1671_s1, %s1473_s15  ;;  %s306_s7 = scalar_lea.vmem %s1673_s3, %s1473_s15 }
  0x11   : > { %v1482_v16 = vld [vmem:[%s1584_s20] ss:$8 sps:$4 sm:$0xff]   ;;  %s1602_s10 = scalar_lea.vmem %s1670_s0, %s1473_s15  ;;  %v1484_v18 = vld [vmem:[%s1584_s20 + $0x10] ss:$8 sps:$4 sm:$0xff]   ;;  %s1609_s13 = scalar_lea.vmem %s1672_s2, %s1473_s15 }
  0x12   : > { %v1483_v17 = vld [vmem:[%s306_s7] ss:$8 sps:$4 sm:$0xff]   ;;  %1362 = vmatprep.mubr.msk.f32.mxu1 %vm331_vm0, %v1482_v16  ;;  %v1485_v19 = vld [vmem:[%s306_s7 + $0x10] ss:$8 sps:$4 sm:$0xff]   ;;  %s1321_s7 = sshll.u32 %s1678_s22, 4 }
  0x13   : > { %1390 = vmatprep.mubr.msk.f32.mxu0 %vm331_vm0, %v1483_v17  ;;  %1363 = vmatmul.mubr.msk.f32.vlgmr.msra.gmra.mrb[0].mxu1 %vm331_vm0, %v1484_v18  ;;  %v1486_v21 = vld [vmem:[%s1602_s10] ss:$8 sps:$4 sm:$0xff]   ;;  %v1488_v28 = vld [vmem:[%s1602_s10 + $0x10] ss:$8 sps:$4 sm:$0xff]   ;;  %s311_s9 = scalar_lea.vmem %s1676_s6, %s1321_s7 }
  0x14   : > { %1391 = vmatmul.mubr.msk.f32.vlgmr.msra.gmra.mrb[0].mxu0 %vm331_vm0, %v1485_v19  ;;  %1428 = vmatpush3.bf16.msra.mxu1 %v1425_v11  ;;  %v1487_v23 = vld [vmem:[%s1609_s13 + $0x1] ss:$8 sps:$4 sm:$0xff]   ;;  %v1489_v29 = vld [vmem:[%s1609_s13 + $0x11] ss:$8 sps:$4 sm:$0xff]  }
  0x15   : > { %1444 = vmatpush3.bf16.msra.mxu0 %v1441_v8  ;;  %1369 = vmatprep.mubr.msk.f32.mxu1 %vm331_vm0, %v1486_v21  ;;  %v1490_v30 = vld [vmem:[%s1602_s10 + $0x1] ss:$8 sps:$4 sm:$0xff]   ;;  %v1492_v36 = vld [vmem:[%s1602_s10 + $0x11] ss:$8 sps:$4 sm:$0xff]  }
  0x16   : > { %1397 = vmatprep.mubr.msk.f32.mxu0 %vm331_vm0, %v1487_v23  ;;  %1446 = vmatprep.subr.bf16.mxu0 %v1445_v20  ;;  %v1491_v31 = vld [vmem:[%s1602_s10 + $0x8] ss:$8 sps:$4 sm:$0xff]   ;;  %v1493_v37 = vld [vmem:[%s1602_s10 + $0x18] ss:$8 sps:$4 sm:$0xff]  }
  0x17   : > { %1430 = vmatprep.subr.bf16.mxu1 %v1429_v22  ;;  %v1494_v38 = vld [vmem:[%s1609_s13] ss:$8 sps:$4 sm:$0xff]   ;;  %v1496_v41 = vld [vmem:[%s1609_s13 + $0x10] ss:$8 sps:$4 sm:$0xff]  }
  0x18   : > { %v1495_v39 = vld [vmem:[%s1584_s20 + $0x8] ss:$8 sps:$4 sm:$0xff]   ;;  %v1497_v42 = vld [vmem:[%s1584_s20 + $0x18] ss:$8 sps:$4 sm:$0xff]  }
  0x19   : > { %v1498_v43 = vld [vmem:[%s1602_s10 + $0x9] ss:$8 sps:$4 sm:$0xff]   ;;  %v1499_v44 = vld [vmem:[%s1602_s10 + $0x19] ss:$8 sps:$4 sm:$0xff]  }
  0x1b   : > { %1370 = vmatmul.mubr.msk.f32.vlgmr.msra.gmra.mrb[0].mxu1 %vm331_vm0, %v1488_v28 }
  0x1c   : > { %1398 = vmatmul.mubr.msk.f32.vlgmr.msra.gmra.mrb[0].mxu0 %vm331_vm0, %v1489_v29  ;;  %1432 = vmatpush3.bf16.msra.mxu1 %v1429_v22 }
  0x1d   : > { %1448 = vmatpush3.bf16.msra.mxu0 %v1445_v20  ;;  %1376 = vmatprep.mubr.msk.f32.mxu1 %vm331_vm0, %v1490_v30 }
  0x1e   : > { %1404 = vmatprep.mubr.msk.f32.mxu0 %vm331_vm0, %v1491_v31  ;;  %1450 = vmatprep.subr.bf16.mxu0 %v1449_v32 }
  0x1f   : > { %1434 = vmatprep.subr.bf16.mxu1 %v1433_v33 }
  0x23   : > { %1377 = vmatmul.mubr.msk.f32.vlgmr.msra.gmra.mrb[0].mxu1 %vm331_vm0, %v1492_v36 }
  0x24   : > { %1405 = vmatmul.mubr.msk.f32.vlgmr.msra.gmra.mrb[0].mxu0 %vm331_vm0, %v1493_v37  ;;  %1436 = vmatpush3.bf16.msra.mxu1 %v1433_v33 }
  0x25   : > { %1452 = vmatpush3.bf16.msra.mxu0 %v1449_v32  ;;  %1383 = vmatprep.mubr.msk.f32.mxu1 %vm331_vm0, %v1494_v38 }
  0x26   : > { %1411 = vmatprep.mubr.msk.f32.mxu0 %vm331_vm0, %v1495_v39  ;;  %1454 = vmatprep.subr.bf16.mxu0 %v1453_v40 }
  0x2b   : > { %1384 = vmatmul.mubr.msk.f32.vlgmr.msra.gmra.mrb[0].mxu1 %vm331_vm0, %v1496_v41 }
  0x2c   : > { %1412 = vmatmul.mubr.msk.f32.vlgmr.msra.gmra.mrb[0].mxu0 %vm331_vm0, %v1497_v42 }
  0x2d   : > { %1456 = vmatpush3.bf16.msra.mxu0 %v1453_v40  ;;  %1418 = vmatprep.mubr.msk.f32.mxu0 %vm331_vm0, %v1498_v43 }
  0x34   : > { %1419 = vmatmul.mubr.msk.f32.vlgmr.msra.gmra.mrb[0].mxu0 %vm331_vm0, %v1499_v44 }
  0xfe   : > { %v1385_v45 = vpop.f32.mrb[0].mxu1 }
  0xff   : > { %v673_v46 = vpop.f32.mrb[1].mxu1 }
 0x107   : > { %v1420_v47 = vpop.f32.mrb[0].mxu0 }
 0x108   : > { %v1457_v49 = vadd.f32 %v1420_v47, %v1385_v45  ;;  %v1145_v50 = vpop.f32.mrb[1].mxu0 }
 0x109   : > { %v1458_v51 = vadd.f32 %v1145_v50, %v673_v46 }
 0x10a   : > { %v1164_v52 = vadd.f32 %v1457_v49, %v1318_v48 }
 0x10b   : > { %v1163_v53 = vadd.f32 %v1458_v51, %v1318_v48 }
 0x10c   : > { %v1166_v54 = vmax.f32 %v1164_v52, 0.0 }
 0x10d   : > { %v1165_v55 = vmax.f32 %v1163_v53, 0.0 }
 0x10e   : > { %1169 = vst.msk [vmem:[%s311_s9 + $0x8] sm:$0xff] %vm1167_vm1, %v1166_v54 }
 0x10f   : > { %1168 = vst.msk [vmem:[%s311_s9] sm:$0xff] %vm1167_vm1, %v1165_v55 }
 0x110 PF: > { %s16_s21 = sadd.s32 1, %s1506_s21  }
 0x111   : > { %p13_p4 = scmp.ge.s32.totalorder %s16_s21, 4  }
 0x113   :  { %15 = sbr.rel (!%p13_p4) target bundleno = 1 (0x1), region = 93 }

// kernel: if_block_forward.13
= control target key start
LH: loop header
LB: loop body
LE: loop exit
PB: predicated region body
PF: predicated region fallthrough
CT: control target
= control target key end

     0   :  { %s1483_s12 = smov 0   ;;  %s1655_s0 = inlined_call_operand.vmem [shape: f32[2,6,6,32], index: 0, kind: input, shape index: {}]   ;;  %s1656_s1 = inlined_call_operand.vmem [shape: f32[9,32,32], index: 1, kind: input, shape index: {}]   ;;  %s1657_s2 = inlined_call_operand.vmem [shape: f32[1,32], index: 2, kind: input, shape index: {}]   ;;  %s1658_s3 = inlined_call_operand.vmem [shape: f32[2,16,32], index: 3, kind: output, shape index: {}]  }
   0x1 LB: > { %s1101_s13 = sadd.s32 4294967295, %s1461_s12   ;;  %p1105_p0 = scmp.ge.s32.totalorder %s1461_s12, 1  ;;  %s1461_s12 = sphi %s1483_s12, %s13_s12  }
   0x2   : > { %p137_p1 = scmp.lt.s32.totalorder %s1461_s12, 3 }
   0x4   : > { %p138_p2 = pnand %p1105_p0, %p137_p1 }
   0x5   : > { %v1109_v0 = vld [vmem:[%s1656_s1 + $0x20] sm:$0xff] (!%p138_p2)  ;;  %v1110_v1 = vld [vmem:[%s1656_s1 + $0x28] sm:$0xff] (!%p138_p2)  ;;  %p161_p3 = scmp.lt.s32.totalorder (!%p138_p2), %s1101_s13, 1  ;;  %v1111_v5 = vld [vmem:[%s1656_s1 + $0x30] sm:$0xff] (!%p138_p2)  ;;  %vm194_vm0 = vcmask (!%p138_p2), 261120  }
   0x6   : > { %141 = sbr.rel (%p138_p2) target bundleno = 272 (0x110), region = 32  ;;  %v1137_v2 = vld [vmem:[%s1656_s1 + $0x80] sm:$0xff] (!%p138_p2)  ;;  %v1340_v3 = vpack.c.bf16 (!%p138_p2), %v1110_v1, %v1109_v0  ;;  %v1138_v4 = vld [vmem:[%s1656_s1 + $0x88] sm:$0xff] (!%p138_p2)  ;;  %v1112_v6 = vld [vmem:[%s1656_s1 + $0x38] sm:$0xff] (!%p138_p2) }
   0x7   : > { %v1372_v7 = vpack.c.bf16 (!%p138_p2), %v1138_v4, %v1137_v2  ;;  %v1344_v8 = vpack.c.bf16 (!%p138_p2), %v1112_v6, %v1111_v5  ;;  %v1139_v9 = vld [vmem:[%s1656_s1 + $0x90] sm:$0xff] (!%p138_p2)  ;;  %v1140_v10 = vld [vmem:[%s1656_s1 + $0x98] sm:$0xff] (!%p138_p2)  ;;  %v175_v12 = vld [vmem:[%s1656_s1] sm:$0xff] (!%p138_p2) }
   0x8   : > { %1341 = vmatprep.subr.bf16.mxu1 (!%p138_p2), %v1340_v3  ;;  %v1376_v11 = vpack.c.bf16 (!%p138_p2), %v1140_v10, %v1139_v9  ;;  %v176_v13 = vld [vmem:[%s1656_s1 + $0x8] sm:$0xff] (!%p138_p2)  ;;  %v1147_v14 = vld [vmem:[%s1656_s1 + $0xa0] sm:$0xff] (!%p138_p2)  ;;  %v177_v16 = vld [vmem:[%s1656_s1 + $0x10] sm:$0xff] (!%p138_p2) }
   0x9   : > { %1373 = vmatprep.subr.bf16.mxu0 (!%p138_p2), %v1372_v7  ;;  %1343 = vmatpush3.bf16.msra.mxu1 (!%p138_p2), %v1340_v3  ;;  %v1148_v15 = vld [vmem:[%s1656_s1 + $0xa8] sm:$0xff] (!%p138_p2)  ;;  %v1348_v17 = vpack.c.bf16 (!%p138_p2), %v176_v13, %v175_v12  ;;  %v178_v18 = vld [vmem:[%s1656_s1 + $0x18] sm:$0xff] (!%p138_p2)  ;;  %v1149_v19 = vld [vmem:[%s1656_s1 + $0xb0] sm:$0xff] (!%p138_p2) }
   0xa   : > { %1375 = vmatpush3.bf16.msra.mxu0 (!%p138_p2), %v1372_v7  ;;  %1345 = vmatprep.subr.bf16.mxu1 (!%p138_p2), %v1344_v8  ;;  %v1150_v20 = vld [vmem:[%s1656_s1 + $0xb8] sm:$0xff] (!%p138_p2)  ;;  %v1380_v22 = vpack.c.bf16 (!%p138_p2), %v1148_v15, %v1147_v14  ;;  %v1117_v24 = vld [vmem:[%s1656_s1 + $0x40] sm:$0xff] (!%p138_p2)  ;;  %v1118_v25 = vld [vmem:[%s1656_s1 + $0x48] sm:$0xff] (!%p138_p2)  ;;  %v1352_v27 = vpack.c.bf16 (!%p138_p2), %v178_v18, %v177_v16 }
   0xb   : > { %1377 = vmatprep.subr.bf16.mxu0 (!%p138_p2), %v1376_v11  ;;  %v1157_v28 = vld [vmem:[%s1656_s1 + $0xc0] sm:$0xff] (!%p138_p2)  ;;  %v1158_v29 = vld [vmem:[%s1656_s1 + $0xc8] sm:$0xff] (!%p138_p2)  ;;  %v1384_v31 = vpack.c.bf16 (!%p138_p2), %v1150_v20, %v1149_v19  ;;  %v1356_v34 = vpack.c.bf16 (!%p138_p2), %v1118_v25, %v1117_v24  ;;  %v1119_v35 = vld [vmem:[%s1656_s1 + $0x50] sm:$0xff] (!%p138_p2) }
   0xc   : > { %v1388_v37 = vpack.c.bf16 (!%p138_p2), %v1158_v29, %v1157_v28  ;;  %v1120_v38 = vld [vmem:[%s1656_s1 + $0x58] sm:$0xff] (!%p138_p2)  ;;  %v1159_v39 = vld [vmem:[%s1656_s1 + $0xd0] sm:$0xff] (!%p138_p2)  ;;  %v1127_v46 = vld [vmem:[%s1656_s1 + $0x60] sm:$0xff] (!%p138_p2) }
   0xd   : > { %s1660_s13 = smov (!%p161_p3, %s1101_s13), 1  ;;  %1347 = vmatpush3.bf16.msra.mxu1 %v1344_v8  ;;  %v1160_v40 = vld [vmem:[%s1656_s1 + $0xd8] sm:$0xff]  ;;  %v1360_v42 = vpack.c.bf16 %v1120_v38, %v1119_v35  ;;  %v1128_v47 = vld [vmem:[%s1656_s1 + $0x68] sm:$0xff]  ;;  %v1167_v48 = vld [vmem:[%s1656_s1 + $0xe0] sm:$0xff] }
   0xe   : > { %s1428_s7 = smul.u32 48, %s1660_s13  ;;  %1379 = vmatpush3.bf16.msra.mxu0 %v1376_v11  ;;  %1349 = vmatprep.subr.bf16.mxu1 %v1348_v17  ;;  %v1392_v44 = vpack.c.bf16 %v1160_v40, %v1159_v39  ;;  %v1364_v50 = vpack.c.bf16 %v1128_v47, %v1127_v46  ;;  %v1168_v51 = vld [vmem:[%s1656_s1 + $0xe8] sm:$0xff]  ;;  %v1129_v52 = vld [vmem:[%s1656_s1 + $0x70] sm:$0xff]  ;;  %v1130_v54 = vld [vmem:[%s1656_s1 + $0x78] sm:$0xff]  ;;  %s1186_s19 = sshll.u32 %s1660_s13, 4 }
   0xf   : > { %1381 = vmatprep.subr.bf16.mxu0 %v1380_v22  ;;  %v1396_v53 = vpack.c.bf16 %v1168_v51, %v1167_v48  ;;  %v1169_v55 = vld [vmem:[%s1656_s1 + $0xf0] sm:$0xff]  ;;  %v1170_v56 = vld [vmem:[%s1656_s1 + $0xf8] sm:$0xff]  ;;  %v1368_v58 = vpack.c.bf16 %v1130_v54, %v1129_v52  ;;  %v1177_v62 = vld [vmem:[%s1656_s1 + $0x100] sm:$0xff]  ;;  %s170_s22 = scalar_lea.vmem %s1658_s3, %s1186_s19 }
  0x10   : > { %s1536_s18 = scalar_lea.vmem %s1655_s0, %s1428_s7  ;;  %v1400_v59 = vpack.c.bf16 %v1170_v56, %v1169_v55  ;;  %v1178_v63 = vld [vmem:[%s1656_s1 + $0x108] sm:$0xff]  ;;  %v1179_v2 = vld [vmem:[%s1656_s1 + $0x110] sm:$0xff]  ;;  %v1180_v3 = vld [vmem:[%s1656_s1 + $0x118] sm:$0xff] }
  0x11   : > { %v1437_v21 = vld [vmem:[%s1536_s18 + $0x1] ss:$8 sps:$4 sm:$0xff]   ;;  %v1439_v26 = vld [vmem:[%s1536_s18 + $0x11] ss:$8 sps:$4 sm:$0xff]   ;;  %v1404_v0 = vpack.c.bf16 %v1178_v63, %v1177_v62  ;;  %v1408_v6 = vpack.c.bf16 %v1180_v3, %v1179_v2  ;;  %v1183_v11 = vld [vmem:[%s1657_s2] ss:$0 sm:$0xff] }
  0x12   : > { %v1438_v23 = vld [vmem:[%s1536_s18 + $0x9] ss:$8 sps:$4 sm:$0xff]   ;;  %1249 = vmatprep.mubr.msk.f32.mxu1 %vm194_vm0, %v1437_v21  ;;  %v1440_v30 = vld [vmem:[%s1536_s18 + $0x19] ss:$8 sps:$4 sm:$0xff]  }
  0x13   : > { %1293 = vmatprep.mubr.msk.f32.mxu0 %vm194_vm0, %v1438_v23  ;;  %1250 = vmatmul.mubr.msk.f32.vlgmr.msra.gmra.mrb[0].mxu1 %vm194_vm0, %v1439_v26  ;;  %v1441_v32 = vld [vmem:[%s1536_s18] ss:$8 sps:$4 sm:$0xff]   ;;  %v1443_v36 = vld [vmem:[%s1536_s18 + $0x10] ss:$8 sps:$4 sm:$0xff]  }
  0x14   : > { %1294 = vmatmul.mubr.msk.f32.vlgmr.msra.gmra.mrb[0].mxu0 %vm194_vm0, %v1440_v30  ;;  %1351 = vmatpush3.bf16.msra.mxu1 %v1348_v17  ;;  %v1442_v33 = vld [vmem:[%s1536_s18 + $0xa] ss:$8 sps:$4 sm:$0xff]   ;;  %v1444_v41 = vld [vmem:[%s1536_s18 + $0x1a] ss:$8 sps:$4 sm:$0xff]  }
  0x15   : > { %1383 = vmatpush3.bf16.msra.mxu0 %v1380_v22  ;;  %1353 = vmatprep.subr.bf16.mxu1 %v1352_v27  ;;  %v1445_v43 = vld [vmem:[%s1536_s18 + $0x2] ss:$8 sps:$4 sm:$0xff]   ;;  %v1446_v45 = vld [vmem:[%s1536_s18 + $0x10] ss:$8 sps:$4 sm:$0xff]  }
  0x16   : > { %1385 = vmatprep.subr.bf16.mxu0 %v1384_v31  ;;  %1260 = vmatprep.mubr.msk.f32.mxu1 %vm194_vm0, %v1441_v32  ;;  %v1447_v49 = vld [vmem:[%s1536_s18 + $0x12] ss:$8 sps:$4 sm:$0xff]   ;;  %v1448_v57 = vld [vmem:[%s1536_s18 + $0x20] ss:$8 sps:$4 sm:$0xff]  }
  0x17   : > { %1304 = vmatprep.mubr.msk.f32.mxu0 %vm194_vm0, %v1442_v33  ;;  %v1449_v60 = vld [vmem:[%s1536_s18 + $0x8] ss:$8 sps:$4 sm:$0xff]   ;;  %v1451_v1 = vld [vmem:[%s1536_s18 + $0x18] ss:$8 sps:$4 sm:$0xff]  }
  0x18   : > { %1355 = vmatpush3.bf16.msra.mxu1 %v1352_v27  ;;  %v1450_v61 = vld [vmem:[%s1536_s18 + $0x11] ss:$8 sps:$4 sm:$0xff]   ;;  %v1452_v4 = vld [vmem:[%s1536_s18 + $0x21] ss:$8 sps:$4 sm:$0xff]  }
  0x19   : > { %1387 = vmatpush3.bf16.msra.mxu0 %v1384_v31  ;;  %1357 = vmatprep.subr.bf16.mxu1 %v1356_v34  ;;  %v1453_v5 = vld [vmem:[%s1536_s18 + $0x12] ss:$8 sps:$4 sm:$0xff]   ;;  %v1454_v7 = vld [vmem:[%s1536_s18 + $0x22] ss:$8 sps:$4 sm:$0xff]  }
  0x1a   : > { %1389 = vmatprep.subr.bf16.mxu0 %v1388_v37 }
  0x1b   : > { %1261 = vmatmul.mubr.msk.f32.vlgmr.msra.gmra.mrb[0].mxu1 %vm194_vm0, %v1443_v36 }
  0x1c   : > { %1305 = vmatmul.mubr.msk.f32.vlgmr.msra.gmra.mrb[0].mxu0 %vm194_vm0, %v1444_v41  ;;  %1359 = vmatpush3.bf16.msra.mxu1 %v1356_v34 }
  0x1d   : > { %1391 = vmatpush3.bf16.msra.mxu0 %v1388_v37  ;;  %1361 = vmatprep.subr.bf16.mxu1 %v1360_v42 }
  0x1e   : > { %1393 = vmatprep.subr.bf16.mxu0 %v1392_v44  ;;  %1271 = vmatprep.mubr.msk.f32.mxu1 %vm194_vm0, %v1445_v43 }
  0x1f   : > { %1315 = vmatprep.mubr.msk.f32.mxu0 %vm194_vm0, %v1446_v45 }
  0x20   : > { %1363 = vmatpush3.bf16.msra.mxu1 %v1360_v42 }
  0x21   : > { %1395 = vmatpush3.bf16.msra.mxu0 %v1392_v44  ;;  %1365 = vmatprep.subr.bf16.mxu1 %v1364_v50 }
  0x22   : > { %1397 = vmatprep.subr.bf16.mxu0 %v1396_v53 }
  0x23   : > { %1272 = vmatmul.mubr.msk.f32.vlgmr.msra.gmra.mrb[0].mxu1 %vm194_vm0, %v1447_v49 }
  0x24   : > { %1316 = vmatmul.mubr.msk.f32.vlgmr.msra.gmra.mrb[0].mxu0 %vm194_vm0, %v1448_v57  ;;  %1367 = vmatpush3.bf16.msra.mxu1 %v1364_v50 }
  0x25   : > { %1399 = vmatpush3.bf16.msra.mxu0 %v1396_v53  ;;  %1369 = vmatprep.subr.bf16.mxu1 %v1368_v58 }
  0x26   : > { %1401 = vmatprep.subr.bf16.mxu0 %v1400_v59  ;;  %1282 = vmatprep.mubr.msk.f32.mxu1 %vm194_vm0, %v1449_v60 }
  0x27   : > { %1326 = vmatprep.mubr.msk.f32.mxu0 %vm194_vm0, %v1450_v61 }
  0x28   : > { %1371 = vmatpush3.bf16.msra.mxu1 %v1368_v58 }
  0x29   : > { %1403 = vmatpush3.bf16.msra.mxu0 %v1400_v59 }
  0x2a   : > { %1405 = vmatprep.subr.bf16.mxu0 %v1404_v0 }
  0x2b   : > { %1283 = vmatmul.mubr.msk.f32.vlgmr.msra.gmra.mrb[0].mxu1 %vm194_vm0, %v1451_v1 }
  0x2c   : > { %1327 = vmatmul.mubr.msk.f32.vlgmr.msra.gmra.mrb[0].mxu0 %vm194_vm0, %v1452_v4 }
  0x2d   : > { %1407 = vmatpush3.bf16.msra.mxu0 %v1404_v0  ;;  %1337 = vmatprep.mubr.msk.f32.mxu0 %vm194_vm0, %v1453_v5 }
  0x2e   : > { %1409 = vmatprep.subr.bf16.mxu0 %v1408_v6 }
  0x31   : > { %1411 = vmatpush3.bf16.msra.mxu0 %v1408_v6 }
  0x34   : > { %1338 = vmatmul.mubr.msk.f32.vlgmr.msra.gmra.mrb[0].mxu0 %vm194_vm0, %v1454_v7 }
  0xfe   : > { %v1284_v8 = vpop.f32.mrb[0].mxu1 }
  0xff   : > { %v541_v9 = vpop.f32.mrb[1].mxu1 }
 0x107   : > { %v1339_v10 = vpop.f32.mrb[0].mxu0 }
 0x108   : > { %v1412_v12 = vadd.f32 %v1339_v10, %v1284_v8  ;;  %v1022_v13 = vpop.f32.mrb[1].mxu0 }
 0x109   : > { %v1413_v14 = vadd.f32 %v1022_v13, %v541_v9 }
 0x10a   : > { %v1041_v15 = vadd.f32 %v1412_v12, %v1183_v11 }
 0x10b   : > { %v1040_v16 = vadd.f32 %v1413_v14, %v1183_v11 }
 0x10c   : > { %v1043_v17 = vmax.f32 %v1041_v15, 0.0 }
 0x10d   : > { %v1042_v18 = vmax.f32 %v1040_v16, 0.0 }
 0x10e   : > { %1045 = vst.msk [vmem:[%s170_s22 + $0x8] sm:$0xff] %vm194_vm0, %v1043_v17 }
 0x10f   : > { %1044 = vst.msk [vmem:[%s170_s22] sm:$0xff] %vm194_vm0, %v1042_v18 }
 0x110 PF: > { %s13_s12 = sadd.s32 1, %s1461_s12  }
 0x111   : > { %p10_p4 = scmp.ge.s32.totalorder %s13_s12, 4  }
 0x113   :  { %12 = sbr.rel (!%p10_p4) target bundleno = 1 (0x1), region = 72 }

// kernel: if_block_forward.11
= control target key start
LH: loop header
LB: loop body
LE: loop exit
PB: predicated region body
PF: predicated region fallthrough
CT: control target
= control target key end

     0   :  { %s2225_s21 = smov 0   ;;  %s2494_s0 = inlined_call_operand.vmem [shape: f32[2,9,9,4], index: 0, kind: input, shape index: {}]   ;;  %s2495_s1 = inlined_call_operand.vmem [shape: f32[2,9,9,4], index: 1, kind: input, shape index: {}]   ;;  %s2496_s2 = inlined_call_operand.vmem [shape: f32[2,9,9,4], index: 2, kind: input, shape index: {}]   ;;  %s2497_s3 = inlined_call_operand.vmem [shape: f32[2,9,9,4], index: 3, kind: input, shape index: {}]   ;;  %s2498_s4 = inlined_call_operand.vmem [shape: f32[9,4,16], index: 4, kind: input, shape index: {}]   ;;  %s2499_s5 = inlined_call_operand.vmem [shape: f32[1,16], index: 5, kind: input, shape index: {}]   ;;  %s2500_s6 = inlined_call_operand.vmem [shape: f32[2,64,16], index: 6, kind: output, shape index: {}]  }
   0x1 LB: > { %s1772_s22 = sadd.s32 4294967295, %s2188_s21   ;;  %p1776_p0 = scmp.ge.s32.totalorder %s2188_s21, 1  ;;  %s2188_s21 = sphi %s2225_s21, %s16_s21  }
   0x2   : > { %p242_p1 = scmp.lt.s32.totalorder %s2188_s21, 3 }
   0x4   : > { %p243_p2 = pnand %p1776_p0, %p242_p1 }
   0x5   : > { %v1783_v0 = vld [vmem:[%s2498_s4 + $0x4] sm:$0xf] (!%p243_p2)  ;;  %vm356_vm0 = vcmask (!%p243_p2), 1043456   ;;  %v2239_v1 = vld [vmem:[%s2498_s4 + $0x10] sm:$0xf] (!%p243_p2)  ;;  %p287_p3 = scmp.lt.s32.totalorder (!%p243_p2), %s1772_s22, 1 }
   0x6   : > { %246 = sbr.rel (%p243_p2) target bundleno = 308 (0x134), region = 44  ;;  %1981 = vmatprep.subr.msk.mxu1 (!%p243_p2), %vm356_vm0, %v1783_v0  ;;  %2037 = vmatprep.subr.msk.mxu0 (!%p243_p2), %vm356_vm0, %v2239_v1  ;;  %v320_v2 = vld [vmem:[%s2498_s4] sm:$0xf] (!%p243_p2)  ;;  %v1832_v3 = vld [vmem:[%s2498_s4 + $0x14] sm:$0xf] (!%p243_p2)  ;;  %vm331_vm1 = vcmask (!%p243_p2), 31744  }
   0x7   : > { %1982 = vmatpush3.msk.msra.mxu1 (!%p243_p2), %vm356_vm0, %v1783_v0  ;;  %2038 = vmatpush3.msk.msra.mxu0 (!%p243_p2), %vm356_vm0, %v2239_v1  ;;  %v1850_v10 = vld [vmem:[%s2498_s4 + $0x18] sm:$0xf] (!%p243_p2)  ;;  %v1802_v12 = vld [vmem:[%s2498_s4 + $0x8] sm:$0xf] (!%p243_p2)  ;;  %v1868_v20 = vld [vmem:[%s2498_s4 + $0x1c] sm:$0xf] (!%p243_p2) }
   0x8   : > { %1995 = vmatprep.subr.msk.mxu1 (!%p243_p2), %vm356_vm0, %v320_v2  ;;  %2051 = vmatprep.subr.msk.mxu0 (!%p243_p2), %vm356_vm0, %v1832_v3  ;;  %v1812_v29 = vld [vmem:[%s2498_s4 + $0xc] sm:$0xf] (!%p243_p2)  ;;  %v1886_v35 = vld [vmem:[%s2498_s4 + $0x20] sm:$0xf] (!%p243_p2)  ;;  %vm1672_vm2 = vcmask (!%p243_p2), 130048  }
   0xd   : > { %s2502_s22 = smov (!%p287_p3, %s1772_s22), 1 }
   0xe   : > { %s2258_s7 = smul.u32 144, %s2502_s22 }
  0x10   : > { %s2264_s10 = scalar_lea.vmem %s2495_s1, %s2258_s7  ;;  %s2271_s13 = scalar_lea.vmem %s2497_s3, %s2258_s7 }
  0x11   : > { %v321_v4 = vld [vmem:[%s2264_s10] sm:$0xff]  ;;  %v2274_v5 = vld [vmem:[%s2264_s10 + $0x10] sm:$0xff]  ;;  %s2290_s16 = scalar_lea.vmem %s2496_s2, %s2258_s7  ;;  %s2331_s25 = scalar_lea.vmem %s2494_s0, %s2258_s7 }
  0x12   : > { %1983 = vmatprep.mubr.msk.f32.mxu1 %vm331_vm1, %v321_v4  ;;  %v897_v6 = vld [vmem:[%s2271_s13] sm:$0xff]  ;;  %v898_v7 = vld [vmem:[%s2271_s13 + $0x10] sm:$0xff] }
  0x13   : > { %v2280_v8 = vld [vmem:[%s2264_s10 + $0x20] sm:$0xff]  ;;  %2039 = vmatprep.mubr.msk.f32.mxu0 %vm331_vm1, %v897_v6  ;;  %1984 = vmatmul.mubr.msk.f32.vlgmr.msra.gmra.mrb[0].mxu1 %vm331_vm1, %v2274_v5  ;;  %v2298_v11 = vld [vmem:[%s2264_s10 + $0x30] sm:$0xff] }
  0x14   : > { %v899_v9 = vld [vmem:[%s2271_s13 + $0x20] sm:$0xff]  ;;  %1996 = vmatpush3.msk.msra.mxu1 %vm356_vm0, %v320_v2  ;;  %2040 = vmatmul.mubr.msk.f32.vlgmr.msra.gmra.mrb[0].mxu0 %vm331_vm1, %v898_v7  ;;  %v900_v13 = vld [vmem:[%s2271_s13 + $0x30] sm:$0xff] }
  0x15   : > { %2052 = vmatpush3.msk.msra.mxu0 %vm356_vm0, %v1832_v3  ;;  %1986 = vmatprep.mubr.msk.f32.mxu1 %vm331_vm1, %v2280_v8  ;;  %v2308_v14 = vld [vmem:[%s2264_s10 + $0x40] sm:$0xff]  ;;  %v2320_v16 = vld [vmem:[%s2264_s10 + $0x50] sm:$0xff] }
  0x16   : > { %2042 = vmatprep.mubr.msk.f32.mxu0 %vm331_vm1, %v899_v9  ;;  %v1047_v15 = vld [vmem:[%s2290_s16 + $0x1] sm:$0xff]  ;;  %2065 = vmatprep.subr.msk.mxu0 %vm356_vm0, %v1850_v10  ;;  %v1048_v17 = vld [vmem:[%s2290_s16 + $0x11] sm:$0xff] }
  0x17   : > { %1987 = vmatmul.mubr.msk.f32.gmra.mrb[2].mxu1 %vm331_vm1, %v2298_v11  ;;  %2009 = vmatprep.subr.msk.mxu1 %vm356_vm0, %v1802_v12  ;;  %v2325_v18 = vld [vmem:[%s2264_s10 + $0x60] sm:$0xff]  ;;  %v2343_v21 = vld [vmem:[%s2264_s10 + $0x70] sm:$0xff] }
  0x18   : > { %2043 = vmatmul.mubr.msk.f32.gmra.mrb[2].mxu0 %vm331_vm1, %v900_v13  ;;  %1989 = vmatprep.mubr.msk.f32.mxu1 %vm331_vm1, %v2308_v14  ;;  %v1049_v19 = vld [vmem:[%s2290_s16 + $0x21] sm:$0xff]  ;;  %v1050_v22 = vld [vmem:[%s2290_s16 + $0x31] sm:$0xff] }
  0x19   : > { %2053 = vmatprep.mubr.msk.f32.mxu0 %vm331_vm1, %v1047_v15  ;;  %v312_v23 = vld [vmem:[%s2331_s25] sm:$0xff]  ;;  %v313_v25 = vld [vmem:[%s2331_s25 + $0x10] sm:$0xff] }
  0x1a   : > { %v1051_v24 = vld [vmem:[%s2290_s16 + $0x41] sm:$0xff]  ;;  %v1052_v26 = vld [vmem:[%s2290_s16 + $0x51] sm:$0xff] }
  0x1b   : > { %1990 = vmatmul.mubr.msk.f32.gmra.mrb[4].mxu1 %vm331_vm1, %v2320_v16  ;;  %v314_v27 = vld [vmem:[%s2331_s25 + $0x20] sm:$0xff]  ;;  %v315_v30 = vld [vmem:[%s2331_s25 + $0x30] sm:$0xff] }
  0x1c   : > { %2054 = vmatmul.mubr.msk.f32.vlgmr.msra.gmra.mrb[0].mxu0 %vm331_vm1, %v1048_v17  ;;  %1992 = vmatprep.mubr.msk.f32.mxu1 %vm331_vm1, %v2325_v18  ;;  %v1053_v28 = vld [vmem:[%s2290_s16 + $0x61] sm:$0xff]  ;;  %v1054_v31 = vld [vmem:[%s2290_s16 + $0x71] sm:$0xff] }
  0x1d   : > { %2066 = vmatpush3.msk.msra.mxu0 %vm356_vm0, %v1850_v10  ;;  %2056 = vmatprep.mubr.msk.f32.mxu0 %vm331_vm1, %v1049_v19  ;;  %v316_v32 = vld [vmem:[%s2331_s25 + $0x40] sm:$0xff]  ;;  %v317_v33 = vld [vmem:[%s2331_s25 + $0x50] sm:$0xff] }
  0x1e   : > { %2079 = vmatprep.subr.msk.mxu0 %vm356_vm0, %v1868_v20  ;;  %v318_v34 = vld [vmem:[%s2331_s25 + $0x60] sm:$0xff]  ;;  %v319_v36 = vld [vmem:[%s2331_s25 + $0x70] sm:$0xff] }
  0x1f   : > { %1993 = vmatmul.mubr.msk.f32.gmra.mrb[6].mxu1 %vm331_vm1, %v2343_v21  ;;  %v597_v37 = vld [vmem:[%s2331_s25 + $0x1] sm:$0xff]  ;;  %v598_v38 = vld [vmem:[%s2331_s25 + $0x11] sm:$0xff] }
  0x20   : > { %2057 = vmatmul.mubr.msk.f32.gmra.mrb[2].mxu0 %vm331_vm1, %v1050_v22  ;;  %1997 = vmatprep.mubr.msk.f32.mxu1 %vm331_vm1, %v312_v23  ;;  %v599_v39 = vld [vmem:[%s2331_s25 + $0x21] sm:$0xff]  ;;  %v600_v40 = vld [vmem:[%s2331_s25 + $0x31] sm:$0xff] }
  0x21   : > { %2059 = vmatprep.mubr.msk.f32.mxu0 %vm331_vm1, %v1051_v24  ;;  %v1849_v41 = vld [vmem:[%s2331_s25 + $0x80] sm:$0xff]  ;;  %v602_v43 = vld [vmem:[%s2331_s25 + $0x51] sm:$0xff] }
  0x22   : > { %v601_v42 = vld [vmem:[%s2331_s25 + $0x41] sm:$0xff]  ;;  %v604_v45 = vld [vmem:[%s2331_s25 + $0x71] sm:$0xff] }
  0x23   : > { %1998 = vmatmul.mubr.msk.f32.vlgmr.msra.gmra.mrb[0].mxu1 %vm331_vm1, %v313_v25  ;;  %v603_v44 = vld [vmem:[%s2331_s25 + $0x61] sm:$0xff]  ;;  %v748_v47 = vld [vmem:[%s2290_s16 + $0x10] sm:$0xff] }
  0x24   : > { %2010 = vmatpush3.msk.msra.mxu1 %vm356_vm0, %v1802_v12  ;;  %2060 = vmatmul.mubr.msk.f32.gmra.mrb[4].mxu0 %vm331_vm1, %v1052_v26  ;;  %v747_v46 = vld [vmem:[%s2290_s16] sm:$0xff]  ;;  %v750_v49 = vld [vmem:[%s2290_s16 + $0x30] sm:$0xff] }
  0x25   : > { %2000 = vmatprep.mubr.msk.f32.mxu1 %vm331_vm1, %v314_v27  ;;  %2062 = vmatprep.mubr.msk.f32.mxu0 %vm331_vm1, %v1053_v28  ;;  %v749_v48 = vld [vmem:[%s2290_s16 + $0x20] sm:$0xff]  ;;  %v752_v52 = vld [vmem:[%s2290_s16 + $0x50] sm:$0xff] }
  0x26   : > { %2023 = vmatprep.subr.msk.mxu1 %vm356_vm0, %v1812_v29  ;;  %v1867_v50 = vld [vmem:[%s2264_s10 + $0x80] sm:$0xff]  ;;  %v754_v54 = vld [vmem:[%s2290_s16 + $0x70] sm:$0xff]  ;;  %s1899_s10 = sshll.u32 %s2502_s22, 6 }
  0x27   : > { %2001 = vmatmul.mubr.msk.f32.gmra.mrb[2].mxu1 %vm331_vm1, %v315_v30  ;;  %v751_v51 = vld [vmem:[%s2290_s16 + $0x40] sm:$0xff]  ;;  %v902_v56 = vld [vmem:[%s2271_s13 + $0x50] sm:$0xff] }
  0x28   : > { %2063 = vmatmul.mubr.msk.f32.gmra.mrb[6].mxu0 %vm331_vm1, %v1054_v31  ;;  %2003 = vmatprep.mubr.msk.f32.mxu1 %vm331_vm1, %v316_v32  ;;  %v753_v53 = vld [vmem:[%s2290_s16 + $0x60] sm:$0xff]  ;;  %v904_v58 = vld [vmem:[%s2271_s13 + $0x70] sm:$0xff] }
  0x29   : > { %2067 = vmatprep.mubr.msk.f32.mxu0 %vm331_vm1, %v313_v25  ;;  %v901_v55 = vld [vmem:[%s2271_s13 + $0x40] sm:$0xff] }
  0x2a   : > { %v903_v57 = vld [vmem:[%s2271_s13 + $0x60] sm:$0xff]  ;;  %s2473_s13 = scalar_lea.vmem %s2500_s6, %s1899_s10 }
  0x2b   : > { %2004 = vmatmul.mubr.msk.f32.gmra.mrb[4].mxu1 %vm331_vm1, %v317_v33  ;;  %v1885_v59 = vld [vmem:[%s2331_s25 + $0x81] sm:$0xff] }
  0x2c   : > { %2068 = vmatmul.mubr.msk.f32.vlgmr.msra.gmra.mrb[0].mxu0 %vm331_vm1, %v314_v27  ;;  %2006 = vmatprep.mubr.msk.f32.mxu1 %vm331_vm1, %v318_v34 }
  0x2d   : > { %2080 = vmatpush3.msk.msra.mxu0 %vm356_vm0, %v1868_v20  ;;  %2070 = vmatprep.mubr.msk.f32.mxu0 %vm331_vm1, %v315_v30 }
  0x2e   : > { %2093 = vmatprep.subr.msk.mxu0 %vm356_vm0, %v1886_v35 }
  0x2f   : > { %2007 = vmatmul.mubr.msk.f32.gmra.mrb[6].mxu1 %vm331_vm1, %v319_v36 }
  0x30   : > { %2071 = vmatmul.mubr.msk.f32.gmra.mrb[2].mxu0 %vm331_vm1, %v316_v32  ;;  %2011 = vmatprep.mubr.msk.f32.mxu1 %vm331_vm1, %v597_v37 }
  0x31   : > { %2073 = vmatprep.mubr.msk.f32.mxu0 %vm331_vm1, %v317_v33 }
  0x33   : > { %2012 = vmatmul.mubr.msk.f32.vlgmr.msra.gmra.mrb[0].mxu1 %vm331_vm1, %v598_v38 }
  0x34   : > { %2024 = vmatpush3.msk.msra.mxu1 %vm356_vm0, %v1812_v29  ;;  %2074 = vmatmul.mubr.msk.f32.gmra.mrb[4].mxu0 %vm331_vm1, %v318_v34 }
  0x35   : > { %2014 = vmatprep.mubr.msk.f32.mxu1 %vm331_vm1, %v599_v39  ;;  %2076 = vmatprep.mubr.msk.f32.mxu0 %vm331_vm1, %v319_v36 }
  0x36   : > { %2107 = vmatprep.subr.msk.mxu1 %vm356_vm0, %v2239_v1 }
  0x37   : > { %2015 = vmatmul.mubr.msk.f32.gmra.mrb[2].mxu1 %vm331_vm1, %v600_v40 }
  0x38   : > { %2077 = vmatmul.mubr.msk.f32.gmra.mrb[6].mxu0 %vm331_vm1, %v1849_v41  ;;  %2017 = vmatprep.mubr.msk.f32.mxu1 %vm331_vm1, %v601_v42 }
  0x39   : > { %2081 = vmatprep.mubr.msk.f32.mxu0 %vm331_vm1, %v2274_v5 }
  0x3b   : > { %2018 = vmatmul.mubr.msk.f32.gmra.mrb[4].mxu1 %vm331_vm1, %v602_v43 }
  0x3c   : > { %2082 = vmatmul.mubr.msk.f32.vlgmr.msra.gmra.mrb[0].mxu0 %vm331_vm1, %v2280_v8  ;;  %2020 = vmatprep.mubr.msk.f32.mxu1 %vm331_vm1, %v603_v44 }
  0x3d   : > { %2094 = vmatpush3.msk.msra.mxu0 %vm356_vm0, %v1886_v35  ;;  %2084 = vmatprep.mubr.msk.f32.mxu0 %vm331_vm1, %v2298_v11 }
  0x3f   : > { %2021 = vmatmul.mubr.msk.f32.gmra.mrb[6].mxu1 %vm331_vm1, %v604_v45 }
  0x40   : > { %2085 = vmatmul.mubr.msk.f32.gmra.mrb[2].mxu0 %vm331_vm1, %v2308_v14  ;;  %2025 = vmatprep.mubr.msk.f32.mxu1 %vm331_vm1, %v747_v46 }
  0x41   : > { %2087 = vmatprep.mubr.msk.f32.mxu0 %vm331_vm1, %v2320_v16 }
  0x43   : > { %2026 = vmatmul.mubr.msk.f32.vlgmr.msra.gmra.mrb[0].mxu1 %vm331_vm1, %v748_v47 }
  0x44   : > { %2108 = vmatpush3.msk.msra.mxu1 %vm356_vm0, %v2239_v1  ;;  %2088 = vmatmul.mubr.msk.f32.gmra.mrb[4].mxu0 %vm331_vm1, %v2325_v18  ;;  %v1896_v1 = vld [vmem:[%s2499_s5] ss:$0 sm:$0xff] }
  0x45   : > { %2028 = vmatprep.mubr.msk.f32.mxu1 %vm331_vm1, %v749_v48  ;;  %2090 = vmatprep.mubr.msk.f32.mxu0 %vm331_vm1, %v2343_v21 }
  0x47   : > { %2029 = vmatmul.mubr.msk.f32.gmra.mrb[2].mxu1 %vm331_vm1, %v750_v49 }
  0x48   : > { %2091 = vmatmul.mubr.msk.f32.gmra.mrb[6].mxu0 %vm331_vm1, %v1867_v50  ;;  %2031 = vmatprep.mubr.msk.f32.mxu1 %vm331_vm1, %v751_v51 }
  0x49   : > { %2095 = vmatprep.mubr.msk.f32.mxu0 %vm331_vm1, %v598_v38 }
  0x4b   : > { %2032 = vmatmul.mubr.msk.f32.gmra.mrb[4].mxu1 %vm331_vm1, %v752_v52 }
  0x4c   : > { %2096 = vmatmul.mubr.msk.f32.vlgmr.msra.gmra.mrb[0].mxu0 %vm331_vm1, %v599_v39  ;;  %2034 = vmatprep.mubr.msk.f32.mxu1 %vm331_vm1, %v753_v53 }
  0x4d   : > { %2098 = vmatprep.mubr.msk.f32.mxu0 %vm331_vm1, %v600_v40 }
  0x4f   : > { %2035 = vmatmul.mubr.msk.f32.gmra.mrb[6].mxu1 %vm331_vm1, %v754_v54 }
  0x50   : > { %2099 = vmatmul.mubr.msk.f32.gmra.mrb[2].mxu0 %vm331_vm1, %v601_v42  ;;  %2045 = vmatprep.mubr.msk.f32.mxu1 %vm331_vm1, %v901_v55 }
  0x51   : > { %2101 = vmatprep.mubr.msk.f32.mxu0 %vm331_vm1, %v602_v43 }
  0x53   : > { %2046 = vmatmul.mubr.msk.f32.vlgmr.msra.gmra.mrb[4].mxu1 %vm331_vm1, %v902_v56 }
  0x54   : > { %2102 = vmatmul.mubr.msk.f32.gmra.mrb[4].mxu0 %vm331_vm1, %v603_v44  ;;  %2048 = vmatprep.mubr.msk.f32.mxu1 %vm331_vm1, %v903_v57 }
  0x55   : > { %2104 = vmatprep.mubr.msk.f32.mxu0 %vm331_vm1, %v604_v45 }
  0x57   : > { %2049 = vmatmul.mubr.msk.f32.gmra.mrb[6].mxu1 %vm331_vm1, %v904_v58 }
  0x58   : > { %2105 = vmatmul.mubr.msk.f32.gmra.mrb[6].mxu0 %vm331_vm1, %v1885_v59 }
 0x116   : > { %v2027_v60 = vpop.f32.mrb[0].mxu1 }
 0x117   : > { %v850_v61 = vpop.f32.mrb[1].mxu1 }
 0x11a   : > { %v2030_v62 = vpop.f32.mrb[2].mxu1 }
 0x11b   : > { %v860_v63 = vpop.f32.mrb[3].mxu1 }
 0x11f   : > { %v2097_v0 = vpop.f32.mrb[0].mxu0 }
 0x120   : > { %v2109_v2 = vadd.f32 %v2097_v0, %v2027_v60  ;;  %v1602_v3 = vpop.f32.mrb[1].mxu0 }
 0x121   : > { %v2110_v4 = vadd.f32 %v1602_v3, %v850_v61 }
 0x122   : > { %v1657_v5 = vadd.f32 %v2109_v2, %v1896_v1 }
 0x123   : > { %v1656_v6 = vadd.f32 %v2110_v4, %v1896_v1  ;;  %v2100_v7 = vpop.f32.mrb[2].mxu0 }
 0x124   : > { %v1665_v8 = vmax.f32 %v1657_v5, 0.0  ;;  %v2111_v9 = vadd.f32 %v2100_v7, %v2030_v62  ;;  %v1612_v10 = vpop.f32.mrb[3].mxu0 }
 0x125   : > { %v1664_v11 = vmax.f32 %v1656_v6, 0.0  ;;  %v2112_v12 = vadd.f32 %v1612_v10, %v860_v63 }
 0x126   : > { %1674 = vst.msk [vmem:[%s2473_s13 + $0x8] sm:$0xff] %vm1672_vm2, %v1665_v8  ;;  %v1659_v13 = vadd.f32 %v2111_v9, %v1896_v1  ;;  %v2047_v14 = vpop.f32.mrb[4].mxu1 }
 0x127   : > { %1673 = vst.msk [vmem:[%s2473_s13] sm:$0xff] %vm1672_vm2, %v1664_v11  ;;  %v1658_v15 = vadd.f32 %v2112_v12, %v1896_v1  ;;  %v2103_v16 = vpop.f32.mrb[4].mxu0  ;;  %v1020_v17 = vpop.f32.mrb[5].mxu1 }
 0x128   : > { %v1667_v18 = vmax.f32 %v1659_v13, 0.0  ;;  %v2113_v19 = vadd.f32 %v2103_v16, %v2047_v14  ;;  %v1622_v20 = vpop.f32.mrb[5].mxu0 }
 0x129   : > { %v1666_v21 = vmax.f32 %v1658_v15, 0.0  ;;  %v2114_v22 = vadd.f32 %v1622_v20, %v1020_v17 }
 0x12a   : > { %1676 = vst.msk [vmem:[%s2473_s13 + $0x18] sm:$0xff] %vm1672_vm2, %v1667_v18  ;;  %v1661_v23 = vadd.f32 %v2113_v19, %v1896_v1  ;;  %v2050_v24 = vpop.f32.mrb[6].mxu1 }
 0x12b   : > { %1675 = vst.msk [vmem:[%s2473_s13 + $0x10] sm:$0xff] %vm1672_vm2, %v1666_v21  ;;  %v1660_v25 = vadd.f32 %v2114_v22, %v1896_v1  ;;  %v2106_v26 = vpop.f32.mrb[6].mxu0  ;;  %v1030_v27 = vpop.f32.mrb[7].mxu1 }
 0x12c   : > { %v1669_v28 = vmax.f32 %v1661_v23, 0.0  ;;  %v2115_v29 = vadd.f32 %v2106_v26, %v2050_v24  ;;  %v1632_v30 = vpop.f32.mrb[7].mxu0 }
 0x12d   : > { %v1668_v31 = vmax.f32 %v1660_v25, 0.0  ;;  %v2116_v32 = vadd.f32 %v1632_v30, %v1030_v27 }
 0x12e   : > { %1678 = vst.msk [vmem:[%s2473_s13 + $0x28] sm:$0xff] %vm1672_vm2, %v1669_v28  ;;  %v1663_v33 = vadd.f32 %v2115_v29, %v1896_v1 }
 0x12f   : > { %1677 = vst.msk [vmem:[%s2473_s13 + $0x20] sm:$0xff] %vm1672_vm2, %v1668_v31  ;;  %v1662_v34 = vadd.f32 %v2116_v32, %v1896_v1 }
 0x130   : > { %v1671_v35 = vmax.f32 %v1663_v33, 0.0 }
 0x131   : > { %v1670_v36 = vmax.f32 %v1662_v34, 0.0 }
 0x132   : > { %1680 = vst.msk [vmem:[%s2473_s13 + $0x38] sm:$0xff] %vm1672_vm2, %v1671_v35 }
 0x133   : > { %1679 = vst.msk [vmem:[%s2473_s13 + $0x30] sm:$0xff] %vm1672_vm2, %v1670_v36 }
 0x134 PF: > { %s16_s21 = sadd.s32 1, %s2188_s21  }
 0x135   : > { %p13_p4 = scmp.ge.s32.totalorder %s16_s21, 4  }
 0x137   :  { %15 = sbr.rel (!%p13_p4) target bundleno = 1 (0x1), region = 93 }

// kernel: if_block_forward.21
= control target key start
LH: loop header
LB: loop body
LE: loop exit
PB: predicated region body
PF: predicated region fallthrough
CT: control target
= control target key end

     0   :  { %s3730_s12 = smov 0   ;;  %s4330_s0 = inlined_call_operand.vmem [shape: f32[2,11,11,32], index: 0, kind: input, shape index: {}]   ;;  %s4331_s1 = inlined_call_operand.vmem [shape: f32[16,32,5], index: 1, kind: input, shape index: {}]   ;;  %s4332_s2 = inlined_call_operand.vmem [shape: f32[1,5], index: 2, kind: input, shape index: {}]   ;;  %s4333_s3 = inlined_call_operand.vmem [shape: f32[2,64,5], index: 3, kind: output, shape index: {}]  }
   0x1 LB: > { %s2637_s13 = sadd.s32 4294967295, %s3708_s12   ;;  %p2641_p0 = scmp.ge.s32.totalorder %s3708_s12, 1  ;;  %s3708_s12 = sphi %s3730_s12, %s13_s12  }
   0x2   : > { %p137_p1 = scmp.lt.s32.totalorder %s3708_s12, 3 }
   0x4   : > { %p138_p2 = pnand %p2641_p0, %p137_p1 }
   0x5   : > { %v2645_v0 = vld [vmem:[%s4331_s1 + $0x20] sm:$0xff] (!%p138_p2)  ;;  %v2646_v1 = vld [vmem:[%s4331_s1 + $0x28] sm:$0xff] (!%p138_p2)  ;;  %p161_p3 = scmp.lt.s32.totalorder (!%p138_p2), %s2637_s13, 1  ;;  %v2647_v5 = vld [vmem:[%s4331_s1 + $0x30] sm:$0xff] (!%p138_p2)  ;;  %vm196_vm0 = vcmask (!%p138_p2), 261120   ;;  %vm2573_vm1 = vcmask (!%p138_p2), 39936  }
   0x6   : > { %141 = sbr.rel (%p138_p2) target bundleno = 362 (0x16a), region = 32  ;;  %v2777_v2 = vld [vmem:[%s4331_s1 + $0x100] sm:$0xff] (!%p138_p2)  ;;  %v3445_v3 = vpack.c.bf16 (!%p138_p2), %v2646_v1, %v2645_v0  ;;  %v2778_v4 = vld [vmem:[%s4331_s1 + $0x108] sm:$0xff] (!%p138_p2)  ;;  %v2648_v6 = vld [vmem:[%s4331_s1 + $0x38] sm:$0xff] (!%p138_p2) }
   0x7   : > { %v3509_v7 = vpack.c.bf16 (!%p138_p2), %v2778_v4, %v2777_v2  ;;  %v3449_v8 = vpack.c.bf16 (!%p138_p2), %v2648_v6, %v2647_v5  ;;  %v2779_v9 = vld [vmem:[%s4331_s1 + $0x110] sm:$0xff] (!%p138_p2)  ;;  %v2780_v10 = vld [vmem:[%s4331_s1 + $0x118] sm:$0xff] (!%p138_p2)  ;;  %v179_v11 = vld [vmem:[%s4331_s1] sm:$0xff] (!%p138_p2) }
   0x8   : > { %3446 = vmatprep.subr.bf16.mxu1 (!%p138_p2), %v3445_v3  ;;  %v3513_v12 = vpack.c.bf16 (!%p138_p2), %v2780_v10, %v2779_v9  ;;  %v180_v13 = vld [vmem:[%s4331_s1 + $0x8] sm:$0xff] (!%p138_p2)  ;;  %v2797_v14 = vld [vmem:[%s4331_s1 + $0x120] sm:$0xff] (!%p138_p2)  ;;  %v181_v18 = vld [vmem:[%s4331_s1 + $0x10] sm:$0xff] (!%p138_p2) }
   0x9   : > { %v2798_v15 = vld [vmem:[%s4331_s1 + $0x128] sm:$0xff] (!%p138_p2)  ;;  %3510 = vmatprep.subr.bf16.mxu0 (!%p138_p2), %v3509_v7  ;;  %3448 = vmatpush3.bf16.msra.mxu1 (!%p138_p2), %v3445_v3  ;;  %v3453_v16 = vpack.c.bf16 (!%p138_p2), %v180_v13, %v179_v11  ;;  %v182_v21 = vld [vmem:[%s4331_s1 + $0x18] sm:$0xff] (!%p138_p2)  ;;  %v2799_v23 = vld [vmem:[%s4331_s1 + $0x130] sm:$0xff] (!%p138_p2) }
   0xa   : > { %3512 = vmatpush3.bf16.msra.mxu0 (!%p138_p2), %v3509_v7  ;;  %3450 = vmatprep.subr.bf16.mxu1 (!%p138_p2), %v3449_v8  ;;  %v3517_v17 = vpack.c.bf16 (!%p138_p2), %v2798_v15, %v2797_v14  ;;  %v2800_v24 = vld [vmem:[%s4331_s1 + $0x138] sm:$0xff] (!%p138_p2)  ;;  %v3457_v27 = vpack.c.bf16 (!%p138_p2), %v182_v21, %v181_v18  ;;  %v2665_v30 = vld [vmem:[%s4331_s1 + $0x40] sm:$0xff] (!%p138_p2)  ;;  %v2666_v31 = vld [vmem:[%s4331_s1 + $0x48] sm:$0xff] (!%p138_p2) }
   0xb   : > { %3514 = vmatprep.subr.bf16.mxu0 (!%p138_p2), %v3513_v12  ;;  %v3521_v29 = vpack.c.bf16 (!%p138_p2), %v2800_v24, %v2799_v23  ;;  %v2817_v33 = vld [vmem:[%s4331_s1 + $0x140] sm:$0xff] (!%p138_p2)  ;;  %v2818_v34 = vld [vmem:[%s4331_s1 + $0x148] sm:$0xff] (!%p138_p2)  ;;  %v3461_v38 = vpack.c.bf16 (!%p138_p2), %v2666_v31, %v2665_v30  ;;  %v2667_v47 = vld [vmem:[%s4331_s1 + $0x50] sm:$0xff] (!%p138_p2) }
   0xc   : > { %v3525_v39 = vpack.c.bf16 (!%p138_p2), %v2818_v34, %v2817_v33  ;;  %v2668_v48 = vld [vmem:[%s4331_s1 + $0x58] sm:$0xff] (!%p138_p2)  ;;  %v2819_v50 = vld [vmem:[%s4331_s1 + $0x150] sm:$0xff] (!%p138_p2)  ;;  %v2677_v54 = vld [vmem:[%s4331_s1 + $0x60] sm:$0xff] (!%p138_p2) }
   0xd   : > { %s4335_s13 = smov (!%p161_p3, %s2637_s13), 1  ;;  %3452 = vmatpush3.bf16.msra.mxu1 %v3449_v8  ;;  %v2820_v51 = vld [vmem:[%s4331_s1 + $0x158] sm:$0xff]  ;;  %v3465_v52 = vpack.c.bf16 %v2668_v48, %v2667_v47  ;;  %v2678_v55 = vld [vmem:[%s4331_s1 + $0x68] sm:$0xff]  ;;  %v2837_v56 = vld [vmem:[%s4331_s1 + $0x160] sm:$0xff] }
   0xe   : > { %s3693_s11 = smul.u32 176, %s4335_s13  ;;  %3516 = vmatpush3.bf16.msra.mxu0 %v3513_v12  ;;  %3454 = vmatprep.subr.bf16.mxu1 %v3453_v16  ;;  %v3529_v53 = vpack.c.bf16 %v2820_v51, %v2819_v50  ;;  %v2838_v57 = vld [vmem:[%s4331_s1 + $0x168] sm:$0xff]  ;;  %v3469_v58 = vpack.c.bf16 %v2678_v55, %v2677_v54  ;;  %v2679_v0 = vld [vmem:[%s4331_s1 + $0x70] sm:$0xff]  ;;  %v2680_v1 = vld [vmem:[%s4331_s1 + $0x78] sm:$0xff]  ;;  %s2932_s25 = sshll.u32 %s4335_s13, 6 }
   0xf   : > { %3518 = vmatprep.subr.bf16.mxu0 %v3517_v17  ;;  %v3533_v59 = vpack.c.bf16 %v2838_v57, %v2837_v56  ;;  %v2839_v3 = vld [vmem:[%s4331_s1 + $0x170] sm:$0xff]  ;;  %v2840_v4 = vld [vmem:[%s4331_s1 + $0x178] sm:$0xff]  ;;  %v3473_v6 = vpack.c.bf16 %v2680_v1, %v2679_v0  ;;  %v2697_v9 = vld [vmem:[%s4331_s1 + $0x80] sm:$0xff]  ;;  %s4309_s30 = scalar_lea.vmem %s4333_s3, %s2932_s25 }
  0x10   : > { %s3780_s16 = scalar_lea.vmem %s4330_s0, %s3693_s11  ;;  %v3537_v8 = vpack.c.bf16 %v2840_v4, %v2839_v3  ;;  %v2698_v10 = vld [vmem:[%s4331_s1 + $0x88] sm:$0xff]  ;;  %v2857_v11 = vld [vmem:[%s4331_s1 + $0x180] sm:$0xff]  ;;  %v2699_v24 = vld [vmem:[%s4331_s1 + $0x90] sm:$0xff] }
  0x11   : > { %v183_v19 = vld [vmem:[%s3780_s16 + $0x1] sm:$0xff]  ;;  %v3794_v22 = vld [vmem:[%s3780_s16 + $0x11] sm:$0xff]  ;;  %v3477_v15 = vpack.c.bf16 %v2698_v10, %v2697_v9 }
  0x12   : > { %v3787_v20 = vld [vmem:[%s3780_s16 + $0x20] sm:$0xff]  ;;  %3133 = vmatprep.mubr.msk.f32.mxu1 %vm196_vm0, %v183_v19  ;;  %v3805_v25 = vld [vmem:[%s3780_s16 + $0x30] sm:$0xff]  ;;  %v2858_v12 = vld [vmem:[%s4331_s1 + $0x188] sm:$0xff] }
  0x13   : > { %3293 = vmatprep.mubr.msk.f32.mxu0 %vm196_vm0, %v3787_v20  ;;  %v3808_v26 = vld [vmem:[%s3780_s16 + $0x21] sm:$0xff]  ;;  %3134 = vmatmul.mubr.msk.f32.vlgmr.msra.gmra.mrb[0].mxu1 %vm196_vm0, %v3794_v22  ;;  %v3824_v32 = vld [vmem:[%s3780_s16 + $0x31] sm:$0xff] }
  0x14   : > { %v3813_v28 = vld [vmem:[%s3780_s16 + $0x40] sm:$0xff]  ;;  %3294 = vmatmul.mubr.msk.f32.vlgmr.msra.gmra.mrb[0].mxu0 %vm196_vm0, %v3805_v25  ;;  %3456 = vmatpush3.bf16.msra.mxu1 %v3453_v16  ;;  %v3835_v35 = vld [vmem:[%s3780_s16 + $0x50] sm:$0xff]  ;;  %v3541_v16 = vpack.c.bf16 %v2858_v12, %v2857_v11  ;;  %v2860_v31 = vld [vmem:[%s4331_s1 + $0x198] sm:$0xff] }
  0x15   : > { %3520 = vmatpush3.bf16.msra.mxu0 %v3517_v17  ;;  %3136 = vmatprep.mubr.msk.f32.mxu1 %vm196_vm0, %v3808_v26  ;;  %v3838_v36 = vld [vmem:[%s3780_s16 + $0x41] sm:$0xff]  ;;  %v3852_v40 = vld [vmem:[%s3780_s16 + $0x51] sm:$0xff] }
  0x16   : > { %3296 = vmatprep.mubr.msk.f32.mxu0 %vm196_vm0, %v3813_v28  ;;  %v3843_v37 = vld [vmem:[%s3780_s16 + $0x60] sm:$0xff]  ;;  %3458 = vmatprep.subr.bf16.mxu1 %v3457_v27  ;;  %v3857_v41 = vld [vmem:[%s3780_s16 + $0x70] sm:$0xff]  ;;  %v2718_v47 = vld [vmem:[%s4331_s1 + $0xa8] sm:$0xff] }
  0x17   : > { %3137 = vmatmul.mubr.msk.f32.gmra.mrb[2].mxu1 %vm196_vm0, %v3824_v32  ;;  %3522 = vmatprep.subr.bf16.mxu0 %v3521_v29  ;;  %v3860_v42 = vld [vmem:[%s3780_s16 + $0x61] sm:$0xff]  ;;  %v3872_v44 = vld [vmem:[%s3780_s16 + $0x71] sm:$0xff] }
  0x18   : > { %3297 = vmatmul.mubr.msk.f32.gmra.mrb[2].mxu0 %vm196_vm0, %v3835_v35  ;;  %3139 = vmatprep.mubr.msk.f32.mxu1 %vm196_vm0, %v3838_v36  ;;  %v3863_v43 = vld [vmem:[%s3780_s16 + $0x80] sm:$0xff]  ;;  %v3877_v45 = vld [vmem:[%s3780_s16 + $0x90] sm:$0xff]  ;;  %v2878_v50 = vld [vmem:[%s4331_s1 + $0x1a8] sm:$0xff] }
  0x19   : > { %3299 = vmatprep.mubr.msk.f32.mxu0 %vm196_vm0, %v3843_v37  ;;  %3460 = vmatpush3.bf16.msra.mxu1 %v3457_v27  ;;  %v171_v46 = vld [vmem:[%s3780_s16] sm:$0xff]  ;;  %v3892_v49 = vld [vmem:[%s3780_s16 + $0x10] sm:$0xff]  ;;  %v2700_v27 = vld [vmem:[%s4331_s1 + $0x98] sm:$0xff] }
  0x1a   : > { %3524 = vmatpush3.bf16.msra.mxu0 %v3521_v29  ;;  %3462 = vmatprep.subr.bf16.mxu1 %v3461_v38  ;;  %v3931_v60 = vld [vmem:[%s3780_s16 + $0x81] sm:$0xff]  ;;  %v3942_v61 = vld [vmem:[%s3780_s16 + $0x91] sm:$0xff]  ;;  %v3481_v34 = vpack.c.bf16 %v2700_v27, %v2699_v24 }
  0x1b   : > { %3140 = vmatmul.mubr.msk.f32.gmra.mrb[4].mxu1 %vm196_vm0, %v3852_v40  ;;  %3526 = vmatprep.subr.bf16.mxu0 %v3525_v39  ;;  %v455_v62 = vld [vmem:[%s3780_s16 + $0x2] sm:$0xff]  ;;  %v3960_v2 = vld [vmem:[%s3780_s16 + $0x12] sm:$0xff] }
  0x1c   : > { %3300 = vmatmul.mubr.msk.f32.gmra.mrb[4].mxu0 %vm196_vm0, %v3857_v41  ;;  %3142 = vmatprep.mubr.msk.f32.mxu1 %vm196_vm0, %v3860_v42  ;;  %v3946_v63 = vld [vmem:[%s3780_s16 + $0x22] sm:$0xff]  ;;  %v3971_v5 = vld [vmem:[%s3780_s16 + $0x32] sm:$0xff] }
  0x1d   : > { %3302 = vmatprep.mubr.msk.f32.mxu0 %vm196_vm0, %v3863_v43  ;;  %v3976_v7 = vld [vmem:[%s3780_s16 + $0x42] sm:$0xff]  ;;  %v3995_v13 = vld [vmem:[%s3780_s16 + $0x52] sm:$0xff] }
  0x1e   : > { %v4000_v14 = vld [vmem:[%s3780_s16 + $0x62] sm:$0xff]  ;;  %v4011_v17 = vld [vmem:[%s3780_s16 + $0x72] sm:$0xff] }
  0x1f   : > { %3143 = vmatmul.mubr.msk.f32.gmra.mrb[6].mxu1 %vm196_vm0, %v3872_v44  ;;  %v4014_v18 = vld [vmem:[%s3780_s16 + $0x82] sm:$0xff]  ;;  %v4025_v19 = vld [vmem:[%s3780_s16 + $0x92] sm:$0xff] }
  0x20   : > { %3303 = vmatmul.mubr.msk.f32.gmra.mrb[6].mxu0 %vm196_vm0, %v3877_v45  ;;  %3153 = vmatprep.mubr.msk.f32.mxu1 %vm196_vm0, %v171_v46  ;;  %v605_v21 = vld [vmem:[%s3780_s16 + $0x3] sm:$0xff]  ;;  %v4043_v29 = vld [vmem:[%s3780_s16 + $0x13] sm:$0xff] }
  0x21   : > { %3313 = vmatprep.mubr.msk.f32.mxu0 %vm196_vm0, %v3808_v26  ;;  %v4029_v23 = vld [vmem:[%s3780_s16 + $0x23] sm:$0xff]  ;;  %v2859_v30 = vld [vmem:[%s4331_s1 + $0x190] sm:$0xff]  ;;  %v2880_v0 = vld [vmem:[%s4331_s1 + $0x1b8] sm:$0xff] }
  0x22   : > { %v4054_v33 = vld [vmem:[%s3780_s16 + $0x33] sm:$0xff]  ;;  %v2717_v46 = vld [vmem:[%s4331_s1 + $0xa0] sm:$0xff]  ;;  %v2738_v4 = vld [vmem:[%s4331_s1 + $0xc8] sm:$0xff] }
  0x23   : > { %3154 = vmatmul.mubr.msk.f32.vlgmr.msra.gmra.mrb[0].mxu1 %vm196_vm0, %v3892_v49  ;;  %v2877_v48 = vld [vmem:[%s4331_s1 + $0x1a0] sm:$0xff]  ;;  %v4078_v51 = vld [vmem:[%s3780_s16 + $0x53] sm:$0xff]  ;;  %v2758_v10 = vld [vmem:[%s4331_s1 + $0xe8] sm:$0xff] }
  0x24   : > { %3314 = vmatmul.mubr.msk.f32.vlgmr.msra.gmra.mrb[0].mxu0 %vm196_vm0, %v3824_v32  ;;  %3464 = vmatpush3.bf16.msra.mxu1 %v3461_v38  ;;  %v4059_v38 = vld [vmem:[%s3780_s16 + $0x43] sm:$0xff]  ;;  %v3549_v54 = vpack.c.bf16 %v2878_v50, %v2877_v48  ;;  %v4094_v55 = vld [vmem:[%s3780_s16 + $0x73] sm:$0xff] }
  0x25   : > { %3528 = vmatpush3.bf16.msra.mxu0 %v3525_v39  ;;  %3156 = vmatprep.mubr.msk.f32.mxu1 %vm196_vm0, %v3787_v20  ;;  %v3545_v39 = vpack.c.bf16 %v2860_v31, %v2859_v30  ;;  %v4097_v56 = vld [vmem:[%s3780_s16 + $0x83] sm:$0xff]  ;;  %v4108_v57 = vld [vmem:[%s3780_s16 + $0x93] sm:$0xff] }
  0x26   : > { %3316 = vmatprep.mubr.msk.f32.mxu0 %vm196_vm0, %v3838_v36  ;;  %3466 = vmatprep.subr.bf16.mxu1 %v3465_v52  ;;  %v2917_v11 = vld [vmem:[%s4331_s1 + $0x1e0] sm:$0xff] }
  0x27   : > { %3157 = vmatmul.mubr.msk.f32.gmra.mrb[2].mxu1 %vm196_vm0, %v3805_v25  ;;  %3530 = vmatprep.subr.bf16.mxu0 %v3529_v53 }
  0x28   : > { %3317 = vmatmul.mubr.msk.f32.gmra.mrb[2].mxu0 %vm196_vm0, %v3852_v40  ;;  %3159 = vmatprep.mubr.msk.f32.mxu1 %vm196_vm0, %v3813_v28 }
  0x29   : > { %3319 = vmatprep.mubr.msk.f32.mxu0 %vm196_vm0, %v3860_v42  ;;  %3468 = vmatpush3.bf16.msra.mxu1 %v3465_v52  ;;  %v4083_v52 = vld [vmem:[%s3780_s16 + $0x63] sm:$0xff] }
  0x2a   : > { %3532 = vmatpush3.bf16.msra.mxu0 %v3529_v53  ;;  %3470 = vmatprep.subr.bf16.mxu1 %v3469_v58  ;;  %v3485_v53 = vpack.c.bf16 %v2718_v47, %v2717_v46 }
  0x2b   : > { %3160 = vmatmul.mubr.msk.f32.gmra.mrb[4].mxu1 %vm196_vm0, %v3835_v35  ;;  %3534 = vmatprep.subr.bf16.mxu0 %v3533_v59 }
  0x2c   : > { %3320 = vmatmul.mubr.msk.f32.gmra.mrb[4].mxu0 %vm196_vm0, %v3872_v44  ;;  %3162 = vmatprep.mubr.msk.f32.mxu1 %vm196_vm0, %v3843_v37 }
  0x2d   : > { %3322 = vmatprep.mubr.msk.f32.mxu0 %vm196_vm0, %v3931_v60 }
  0x2f   : > { %3163 = vmatmul.mubr.msk.f32.gmra.mrb[6].mxu1 %vm196_vm0, %v3857_v41 }
  0x30   : > { %3323 = vmatmul.mubr.msk.f32.gmra.mrb[6].mxu0 %vm196_vm0, %v3942_v61  ;;  %3173 = vmatprep.mubr.msk.f32.mxu1 %vm196_vm0, %v455_v62  ;;  %v2879_v62 = vld [vmem:[%s4331_s1 + $0x1b0] sm:$0xff] }
  0x31   : > { %3333 = vmatprep.mubr.msk.f32.mxu0 %vm196_vm0, %v3946_v63  ;;  %v3553_v3 = vpack.c.bf16 %v2880_v0, %v2879_v62 }
  0x33   : > { %3174 = vmatmul.mubr.msk.f32.vlgmr.msra.gmra.mrb[0].mxu1 %vm196_vm0, %v3960_v2 }
  0x34   : > { %3334 = vmatmul.mubr.msk.f32.vlgmr.msra.gmra.mrb[0].mxu0 %vm196_vm0, %v3971_v5  ;;  %3472 = vmatpush3.bf16.msra.mxu1 %v3469_v58  ;;  %v2719_v58 = vld [vmem:[%s4331_s1 + $0xb0] sm:$0xff] }
  0x35   : > { %3536 = vmatpush3.bf16.msra.mxu0 %v3533_v59  ;;  %3176 = vmatprep.mubr.msk.f32.mxu1 %vm196_vm0, %v3946_v63  ;;  %v2720_v59 = vld [vmem:[%s4331_s1 + $0xb8] sm:$0xff] }
  0x36   : > { %3336 = vmatprep.mubr.msk.f32.mxu0 %vm196_vm0, %v3976_v7  ;;  %3474 = vmatprep.subr.bf16.mxu1 %v3473_v6  ;;  %v3489_v1 = vpack.c.bf16 %v2720_v59, %v2719_v58 }
  0x37   : > { %3177 = vmatmul.mubr.msk.f32.gmra.mrb[2].mxu1 %vm196_vm0, %v3971_v5  ;;  %3538 = vmatprep.subr.bf16.mxu0 %v3537_v8 }
  0x38   : > { %3337 = vmatmul.mubr.msk.f32.gmra.mrb[2].mxu0 %vm196_vm0, %v3995_v13  ;;  %3179 = vmatprep.mubr.msk.f32.mxu1 %vm196_vm0, %v3976_v7 }
  0x39   : > { %3339 = vmatprep.mubr.msk.f32.mxu0 %vm196_vm0, %v4000_v14  ;;  %3476 = vmatpush3.bf16.msra.mxu1 %v3473_v6  ;;  %v2897_v6 = vld [vmem:[%s4331_s1 + $0x1c0] sm:$0xff] }
  0x3a   : > { %3540 = vmatpush3.bf16.msra.mxu0 %v3537_v8  ;;  %3478 = vmatprep.subr.bf16.mxu1 %v3477_v15 }
  0x3b   : > { %3180 = vmatmul.mubr.msk.f32.gmra.mrb[4].mxu1 %vm196_vm0, %v3995_v13  ;;  %3542 = vmatprep.subr.bf16.mxu0 %v3541_v16 }
  0x3c   : > { %3340 = vmatmul.mubr.msk.f32.gmra.mrb[4].mxu0 %vm196_vm0, %v4011_v17  ;;  %3182 = vmatprep.mubr.msk.f32.mxu1 %vm196_vm0, %v4000_v14 }
  0x3d   : > { %3342 = vmatprep.mubr.msk.f32.mxu0 %vm196_vm0, %v4014_v18 }
  0x3f   : > { %3183 = vmatmul.mubr.msk.f32.gmra.mrb[6].mxu1 %vm196_vm0, %v4011_v17 }
  0x40   : > { %3343 = vmatmul.mubr.msk.f32.gmra.mrb[6].mxu0 %vm196_vm0, %v4025_v19  ;;  %3193 = vmatprep.mubr.msk.f32.mxu1 %vm196_vm0, %v605_v21 }
  0x41   : > { %3353 = vmatprep.mubr.msk.f32.mxu0 %vm196_vm0, %v4029_v23 }
  0x43   : > { %3194 = vmatmul.mubr.msk.f32.vlgmr.msra.gmra.mrb[0].mxu1 %vm196_vm0, %v4043_v29 }
  0x44   : > { %3354 = vmatmul.mubr.msk.f32.vlgmr.msra.gmra.mrb[0].mxu0 %vm196_vm0, %v4054_v33  ;;  %3480 = vmatpush3.bf16.msra.mxu1 %v3477_v15 }
  0x45   : > { %3544 = vmatpush3.bf16.msra.mxu0 %v3541_v16  ;;  %3196 = vmatprep.mubr.msk.f32.mxu1 %vm196_vm0, %v4029_v23 }
  0x46   : > { %3356 = vmatprep.mubr.msk.f32.mxu0 %vm196_vm0, %v4059_v38  ;;  %3482 = vmatprep.subr.bf16.mxu1 %v3481_v34 }
  0x47   : > { %3197 = vmatmul.mubr.msk.f32.gmra.mrb[2].mxu1 %vm196_vm0, %v4054_v33  ;;  %3546 = vmatprep.subr.bf16.mxu0 %v3545_v39 }
  0x48   : > { %3357 = vmatmul.mubr.msk.f32.gmra.mrb[2].mxu0 %vm196_vm0, %v4078_v51  ;;  %3199 = vmatprep.mubr.msk.f32.mxu1 %vm196_vm0, %v4059_v38 }
  0x49   : > { %3359 = vmatprep.mubr.msk.f32.mxu0 %vm196_vm0, %v4083_v52  ;;  %3484 = vmatpush3.bf16.msra.mxu1 %v3481_v34 }
  0x4a   : > { %3548 = vmatpush3.bf16.msra.mxu0 %v3545_v39  ;;  %3486 = vmatprep.subr.bf16.mxu1 %v3485_v53 }
  0x4b   : > { %3200 = vmatmul.mubr.msk.f32.gmra.mrb[4].mxu1 %vm196_vm0, %v4078_v51  ;;  %3550 = vmatprep.subr.bf16.mxu0 %v3549_v54 }
  0x4c   : > { %3360 = vmatmul.mubr.msk.f32.gmra.mrb[4].mxu0 %vm196_vm0, %v4094_v55  ;;  %3202 = vmatprep.mubr.msk.f32.mxu1 %vm196_vm0, %v4083_v52 }
  0x4d   : > { %3362 = vmatprep.mubr.msk.f32.mxu0 %vm196_vm0, %v4097_v56 }
  0x4f   : > { %3203 = vmatmul.mubr.msk.f32.gmra.mrb[6].mxu1 %vm196_vm0, %v4094_v55 }
  0x50   : > { %3363 = vmatmul.mubr.msk.f32.gmra.mrb[6].mxu0 %vm196_vm0, %v4108_v57  ;;  %3213 = vmatprep.mubr.msk.f32.mxu1 %vm196_vm0, %v3892_v49  ;;  %v2737_v49 = vld [vmem:[%s4331_s1 + $0xc0] sm:$0xff] }
  0x51   : > { %3373 = vmatprep.mubr.msk.f32.mxu0 %vm196_vm0, %v3805_v25  ;;  %v3493_v8 = vpack.c.bf16 %v2738_v4, %v2737_v49 }
  0x53   : > { %3214 = vmatmul.mubr.msk.f32.vlgmr.msra.gmra.mrb[0].mxu1 %vm196_vm0, %v3787_v20  ;;  %v2898_v20 = vld [vmem:[%s4331_s1 + $0x1c8] sm:$0xff] }
  0x54   : > { %3374 = vmatmul.mubr.msk.f32.vlgmr.msra.gmra.mrb[0].mxu0 %vm196_vm0, %v3813_v28  ;;  %3488 = vmatpush3.bf16.msra.mxu1 %v3485_v53  ;;  %v3557_v9 = vpack.c.bf16 %v2898_v20, %v2897_v6 }
  0x55   : > { %3552 = vmatpush3.bf16.msra.mxu0 %v3549_v54  ;;  %3216 = vmatprep.mubr.msk.f32.mxu1 %vm196_vm0, %v3805_v25  ;;  %v2856_v25 = vld [vmem:[%s3780_s16 + $0xa0] sm:$0xff] }
  0x56   : > { %3376 = vmatprep.mubr.msk.f32.mxu0 %vm196_vm0, %v3835_v35  ;;  %3490 = vmatprep.subr.bf16.mxu1 %v3489_v1 }
  0x57   : > { %3217 = vmatmul.mubr.msk.f32.gmra.mrb[2].mxu1 %vm196_vm0, %v3813_v28  ;;  %3554 = vmatprep.subr.bf16.mxu0 %v3553_v3  ;;  %v2739_v28 = vld [vmem:[%s4331_s1 + $0xd0] sm:$0xff] }
  0x58   : > { %3377 = vmatmul.mubr.msk.f32.gmra.mrb[2].mxu0 %vm196_vm0, %v3843_v37  ;;  %3219 = vmatprep.mubr.msk.f32.mxu1 %vm196_vm0, %v3835_v35  ;;  %v2740_v35 = vld [vmem:[%s4331_s1 + $0xd8] sm:$0xff] }
  0x59   : > { %3379 = vmatprep.mubr.msk.f32.mxu0 %vm196_vm0, %v3857_v41  ;;  %3492 = vmatpush3.bf16.msra.mxu1 %v3489_v1 }
  0x5a   : > { %3556 = vmatpush3.bf16.msra.mxu0 %v3553_v3  ;;  %3494 = vmatprep.subr.bf16.mxu1 %v3493_v8 }
  0x5b   : > { %3220 = vmatmul.mubr.msk.f32.gmra.mrb[4].mxu1 %vm196_vm0, %v3843_v37  ;;  %3558 = vmatprep.subr.bf16.mxu0 %v3557_v9  ;;  %v2899_v37 = vld [vmem:[%s4331_s1 + $0x1d0] sm:$0xff] }
  0x5c   : > { %3380 = vmatmul.mubr.msk.f32.gmra.mrb[4].mxu0 %vm196_vm0, %v3863_v43  ;;  %3222 = vmatprep.mubr.msk.f32.mxu1 %vm196_vm0, %v3857_v41  ;;  %v2900_v41 = vld [vmem:[%s4331_s1 + $0x1d8] sm:$0xff] }
  0x5d   : > { %3382 = vmatprep.mubr.msk.f32.mxu0 %vm196_vm0, %v3877_v45  ;;  %v3561_v45 = vpack.c.bf16 %v2900_v41, %v2899_v37 }
  0x5f   : > { %3223 = vmatmul.mubr.msk.f32.gmra.mrb[6].mxu1 %vm196_vm0, %v3863_v43  ;;  %v3497_v43 = vpack.c.bf16 %v2740_v35, %v2739_v28 }
  0x60   : > { %3383 = vmatmul.mubr.msk.f32.gmra.mrb[6].mxu0 %vm196_vm0, %v2856_v25  ;;  %3233 = vmatprep.mubr.msk.f32.mxu1 %vm196_vm0, %v3794_v22  ;;  %v2757_v22 = vld [vmem:[%s4331_s1 + $0xe0] sm:$0xff] }
  0x61   : > { %3393 = vmatprep.mubr.msk.f32.mxu0 %vm196_vm0, %v3824_v32  ;;  %v3501_v12 = vpack.c.bf16 %v2758_v10, %v2757_v22 }
  0x63   : > { %3234 = vmatmul.mubr.msk.f32.vlgmr.msra.gmra.mrb[0].mxu1 %vm196_vm0, %v3808_v26  ;;  %v2918_v26 = vld [vmem:[%s4331_s1 + $0x1e8] sm:$0xff] }
  0x64   : > { %3394 = vmatmul.mubr.msk.f32.vlgmr.msra.gmra.mrb[0].mxu0 %vm196_vm0, %v3838_v36  ;;  %3496 = vmatpush3.bf16.msra.mxu1 %v3493_v8  ;;  %v3565_v15 = vpack.c.bf16 %v2918_v26, %v2917_v11 }
  0x65   : > { %3560 = vmatpush3.bf16.msra.mxu0 %v3557_v9  ;;  %3236 = vmatprep.mubr.msk.f32.mxu1 %vm196_vm0, %v3824_v32  ;;  %v2876_v32 = vld [vmem:[%s3780_s16 + $0xa1] sm:$0xff] }
  0x66   : > { %3396 = vmatprep.mubr.msk.f32.mxu0 %vm196_vm0, %v3852_v40  ;;  %3498 = vmatprep.subr.bf16.mxu1 %v3497_v43 }
  0x67   : > { %3237 = vmatmul.mubr.msk.f32.gmra.mrb[2].mxu1 %vm196_vm0, %v3838_v36  ;;  %3562 = vmatprep.subr.bf16.mxu0 %v3561_v45  ;;  %v2759_v36 = vld [vmem:[%s4331_s1 + $0xf0] sm:$0xff] }
  0x68   : > { %3397 = vmatmul.mubr.msk.f32.gmra.mrb[2].mxu0 %vm196_vm0, %v3860_v42  ;;  %3239 = vmatprep.mubr.msk.f32.mxu1 %vm196_vm0, %v3852_v40  ;;  %v2760_v40 = vld [vmem:[%s4331_s1 + $0xf8] sm:$0xff] }
  0x69   : > { %3399 = vmatprep.mubr.msk.f32.mxu0 %vm196_vm0, %v3872_v44  ;;  %3500 = vmatpush3.bf16.msra.mxu1 %v3497_v43 }
  0x6a   : > { %3564 = vmatpush3.bf16.msra.mxu0 %v3561_v45  ;;  %3502 = vmatprep.subr.bf16.mxu1 %v3501_v12 }
  0x6b   : > { %3240 = vmatmul.mubr.msk.f32.gmra.mrb[4].mxu1 %vm196_vm0, %v3860_v42  ;;  %3566 = vmatprep.subr.bf16.mxu0 %v3565_v15  ;;  %v2919_v42 = vld [vmem:[%s4331_s1 + $0x1f0] sm:$0xff] }
  0x6c   : > { %3400 = vmatmul.mubr.msk.f32.gmra.mrb[4].mxu0 %vm196_vm0, %v3931_v60  ;;  %3242 = vmatprep.mubr.msk.f32.mxu1 %vm196_vm0, %v3872_v44  ;;  %v2920_v44 = vld [vmem:[%s4331_s1 + $0x1f8] sm:$0xff] }
  0x6d   : > { %3402 = vmatprep.mubr.msk.f32.mxu0 %vm196_vm0, %v3942_v61  ;;  %v3569_v61 = vpack.c.bf16 %v2920_v44, %v2919_v42 }
  0x6f   : > { %3243 = vmatmul.mubr.msk.f32.gmra.mrb[6].mxu1 %vm196_vm0, %v3931_v60  ;;  %v3505_v60 = vpack.c.bf16 %v2760_v40, %v2759_v36 }
  0x70   : > { %3403 = vmatmul.mubr.msk.f32.gmra.mrb[6].mxu0 %vm196_vm0, %v2876_v32  ;;  %3253 = vmatprep.mubr.msk.f32.mxu1 %vm196_vm0, %v3960_v2  ;;  %v2916_v2 = vld [vmem:[%s3780_s16 + $0xa3] sm:$0xff] }
  0x71   : > { %3413 = vmatprep.mubr.msk.f32.mxu0 %vm196_vm0, %v3971_v5 }
  0x73   : > { %3254 = vmatmul.mubr.msk.f32.vlgmr.msra.gmra.mrb[0].mxu1 %vm196_vm0, %v3946_v63  ;;  %v2896_v63 = vld [vmem:[%s3780_s16 + $0xa2] sm:$0xff] }
  0x74   : > { %3414 = vmatmul.mubr.msk.f32.vlgmr.msra.gmra.mrb[0].mxu0 %vm196_vm0, %v3976_v7  ;;  %3504 = vmatpush3.bf16.msra.mxu1 %v3501_v12 }
  0x75   : > { %3568 = vmatpush3.bf16.msra.mxu0 %v3565_v15  ;;  %3256 = vmatprep.mubr.msk.f32.mxu1 %vm196_vm0, %v3971_v5 }
  0x76   : > { %3416 = vmatprep.mubr.msk.f32.mxu0 %vm196_vm0, %v3995_v13  ;;  %3506 = vmatprep.subr.bf16.mxu1 %v3505_v60 }
  0x77   : > { %3257 = vmatmul.mubr.msk.f32.gmra.mrb[2].mxu1 %vm196_vm0, %v3976_v7  ;;  %3570 = vmatprep.subr.bf16.mxu0 %v3569_v61 }
  0x78   : > { %3417 = vmatmul.mubr.msk.f32.gmra.mrb[2].mxu0 %vm196_vm0, %v4000_v14  ;;  %3259 = vmatprep.mubr.msk.f32.mxu1 %vm196_vm0, %v3995_v13  ;;  %v2929_v13 = vld [vmem:[%s4332_s2] ss:$0 sm:$0xff] }
  0x79   : > { %3419 = vmatprep.mubr.msk.f32.mxu0 %vm196_vm0, %v4011_v17  ;;  %3508 = vmatpush3.bf16.msra.mxu1 %v3505_v60 }
  0x7a   : > { %3572 = vmatpush3.bf16.msra.mxu0 %v3569_v61 }
  0x7b   : > { %3260 = vmatmul.mubr.msk.f32.gmra.mrb[4].mxu1 %vm196_vm0, %v4000_v14 }
  0x7c   : > { %3420 = vmatmul.mubr.msk.f32.gmra.mrb[4].mxu0 %vm196_vm0, %v4014_v18  ;;  %3262 = vmatprep.mubr.msk.f32.mxu1 %vm196_vm0, %v4011_v17 }
  0x7d   : > { %3422 = vmatprep.mubr.msk.f32.mxu0 %vm196_vm0, %v4025_v19 }
  0x7f   : > { %3263 = vmatmul.mubr.msk.f32.gmra.mrb[6].mxu1 %vm196_vm0, %v4014_v18 }
  0x80   : > { %3423 = vmatmul.mubr.msk.f32.gmra.mrb[6].mxu0 %vm196_vm0, %v2896_v63  ;;  %3273 = vmatprep.mubr.msk.f32.mxu1 %vm196_vm0, %v4043_v29 }
  0x81   : > { %3433 = vmatprep.mubr.msk.f32.mxu0 %vm196_vm0, %v4054_v33 }
  0x83   : > { %3274 = vmatmul.mubr.msk.f32.vlgmr.msra.gmra.mrb[0].mxu1 %vm196_vm0, %v4029_v23 }
  0x84   : > { %3434 = vmatmul.mubr.msk.f32.vlgmr.msra.gmra.mrb[0].mxu0 %vm196_vm0, %v4059_v38  ;;  %3276 = vmatprep.mubr.msk.f32.mxu1 %vm196_vm0, %v4054_v33 }
  0x85   : > { %3436 = vmatprep.mubr.msk.f32.mxu0 %vm196_vm0, %v4078_v51 }
  0x87   : > { %3277 = vmatmul.mubr.msk.f32.gmra.mrb[2].mxu1 %vm196_vm0, %v4059_v38 }
  0x88   : > { %3437 = vmatmul.mubr.msk.f32.gmra.mrb[2].mxu0 %vm196_vm0, %v4083_v52  ;;  %3279 = vmatprep.mubr.msk.f32.mxu1 %vm196_vm0, %v4078_v51 }
  0x89   : > { %3439 = vmatprep.mubr.msk.f32.mxu0 %vm196_vm0, %v4094_v55 }
  0x8b   : > { %3280 = vmatmul.mubr.msk.f32.gmra.mrb[4].mxu1 %vm196_vm0, %v4083_v52 }
  0x8c   : > { %3440 = vmatmul.mubr.msk.f32.gmra.mrb[4].mxu0 %vm196_vm0, %v4097_v56  ;;  %3282 = vmatprep.mubr.msk.f32.mxu1 %vm196_vm0, %v4094_v55 }
  0x8d   : > { %3442 = vmatprep.mubr.msk.f32.mxu0 %vm196_vm0, %v4108_v57 }
  0x8f   : > { %3283 = vmatmul.mubr.msk.f32.gmra.mrb[6].mxu1 %vm196_vm0, %v4097_v56 }
  0x90   : > { %3443 = vmatmul.mubr.msk.f32.gmra.mrb[6].mxu0 %vm196_vm0, %v2916_v2 }
 0x156   : > { %v3275_v5 = vpop.f32.mrb[0].mxu1 }
 0x157   : > { %v3435_v7 = vpop.f32.mrb[0].mxu0  ;;  %v1309_v14 = vpop.f32.mrb[1].mxu1 }
 0x158   : > { %v3573_v16 = vadd.f32 %v3435_v7, %v3275_v5  ;;  %v2511_v17 = vpop.f32.mrb[1].mxu0 }
 0x159   : > { %v3574_v18 = vadd.f32 %v2511_v17, %v1309_v14 }
 0x15a   : > { %v2566_v19 = vadd.f32 %v3573_v16, %v2929_v13  ;;  %v3278_v21 = vpop.f32.mrb[2].mxu1 }
 0x15b   : > { %v2565_v23 = vadd.f32 %v3574_v18, %v2929_v13  ;;  %v3438_v24 = vpop.f32.mrb[2].mxu0  ;;  %v1319_v27 = vpop.f32.mrb[3].mxu1 }
 0x15c   : > { %2575 = vst.msk [vmem:[%s4309_s30 + $0x8] sm:$0xff] %vm2573_vm1, %v2566_v19  ;;  %v3575_v29 = vadd.f32 %v3438_v24, %v3278_v21  ;;  %v2521_v30 = vpop.f32.mrb[3].mxu0 }
 0x15d   : > { %2574 = vst.msk [vmem:[%s4309_s30] sm:$0xff] %vm2573_vm1, %v2565_v23  ;;  %v3576_v31 = vadd.f32 %v2521_v30, %v1319_v27 }
 0x15e   : > { %v2568_v33 = vadd.f32 %v3575_v29, %v2929_v13  ;;  %v3281_v34 = vpop.f32.mrb[4].mxu1 }
 0x15f   : > { %v2567_v38 = vadd.f32 %v3576_v31, %v2929_v13  ;;  %v3441_v39 = vpop.f32.mrb[4].mxu0  ;;  %v1329_v46 = vpop.f32.mrb[5].mxu1 }
 0x160   : > { %2577 = vst.msk [vmem:[%s4309_s30 + $0x18] sm:$0xff] %vm2573_vm1, %v2568_v33  ;;  %v3577_v47 = vadd.f32 %v3441_v39, %v3281_v34  ;;  %v2531_v48 = vpop.f32.mrb[5].mxu0 }
 0x161   : > { %2576 = vst.msk [vmem:[%s4309_s30 + $0x10] sm:$0xff] %vm2573_vm1, %v2567_v38  ;;  %v3578_v50 = vadd.f32 %v2531_v48, %v1329_v46 }
 0x162   : > { %v2570_v51 = vadd.f32 %v3577_v47, %v2929_v13  ;;  %v3284_v52 = vpop.f32.mrb[6].mxu1 }
 0x163   : > { %v2569_v53 = vadd.f32 %v3578_v50, %v2929_v13  ;;  %v3444_v54 = vpop.f32.mrb[6].mxu0  ;;  %v1339_v55 = vpop.f32.mrb[7].mxu1 }
 0x164   : > { %2579 = vst.msk [vmem:[%s4309_s30 + $0x28] sm:$0xff] %vm2573_vm1, %v2570_v51  ;;  %v3579_v56 = vadd.f32 %v3444_v54, %v3284_v52  ;;  %v2541_v57 = vpop.f32.mrb[7].mxu0 }
 0x165   : > { %2578 = vst.msk [vmem:[%s4309_s30 + $0x20] sm:$0xff] %vm2573_vm1, %v2569_v53  ;;  %v3580_v58 = vadd.f32 %v2541_v57, %v1339_v55 }
 0x166   : > { %v2572_v59 = vadd.f32 %v3579_v56, %v2929_v13 }
 0x167   : > { %v2571_v62 = vadd.f32 %v3580_v58, %v2929_v13 }
 0x168   : > { %2581 = vst.msk [vmem:[%s4309_s30 + $0x38] sm:$0xff] %vm2573_vm1, %v2572_v59 }
 0x169   : > { %2580 = vst.msk [vmem:[%s4309_s30 + $0x30] sm:$0xff] %vm2573_vm1, %v2571_v62 }
 0x16a PF: > { %s13_s12 = sadd.s32 1, %s3708_s12  }
 0x16b   : > { %p10_p4 = scmp.ge.s32.totalorder %s13_s12, 4  }
 0x16d   :  { %12 = sbr.rel (!%p10_p4) target bundleno = 1 (0x1), region = 80 }

</bundles_post_ra>
